<compile_context>
chip_gen: v7x
topology: tpu7x:2x2x1
jax: 0.10.0
libtpu: 0.0.40
codegen_flags: <defaults>
</compile_context>

<pallas_src>
import functools
import math

import jax
import jax.numpy as jnp
from jax import lax
from jax.experimental import pallas as pl
from jax.experimental.pallas import tpu as pltpu


# ----------------------------------------------------------------------------
# Fused kernel: conv stacks (both branches) + ReLU/BN + head
# ----------------------------------------------------------------------------
def fused_gcn_kernel(adj_ref, x_ref, *refs, num_layers):
    conv_refs = refs[: 2 * num_layers]
    we_ref, be_ref, wenc_ref, wd_ref, bd_ref = refs[2 * num_layers: 2 * num_layers + 5]
    o_ref = refs[-1]

    adj = adj_ref[...]                       # (bb, N, N)  bf16
    h = x_ref[...]                           # (bb, N, F0) bf16  (att ++ deg features)
    bb, N, _ = h.shape

    # --- GraphConv stack (att & deg branches fused via block-diagonal weights) ---
    for layer in range(num_layers):
        w = conv_refs[2 * layer][...]        # (Fin, Fout) bf16, blockdiag(att, deg)
        b = conv_refs[2 * layer + 1][...]    # (1, Fout)   f32
        fin = h.shape[-1]
        fout = w.shape[-1]
        half = fout // 2

        # Branch lane mask, hoisted: built ONCE per layer at (1,1,Fout); broadcasting
        # handles the rest in both the L2-normalize and the BatchNorm below.
        first = lax.broadcasted_iota(jnp.int32, (1, 1, fout), 2) < half

        # y = adj @ h + h  (add_self): bf16 MXU operands, f32 accumulation.
        # Single bf16 pack of the aggregate feeds the weight matmul.
        agg = jnp.einsum("bij,bjf->bif", adj, h,
                         preferred_element_type=jnp.float32) + h
        agg = agg.astype(jnp.bfloat16)
        # Weight stage as one tall matmul over all graphs in the block.
        y = jnp.dot(agg.reshape(bb * N, fin), w,
                    preferred_element_type=jnp.float32)
        y = y.reshape(bb, N, fout) + b

        # F.normalize(y, p=2, dim=2), per branch half.  Second-half sum-of-squares
        # comes from (total - first_half) -> one masked reduction instead of two.
        sq = y * y
        ss_t = jnp.sum(sq, axis=-1, keepdims=True)
        ss_a = jnp.sum(jnp.where(first, sq, 0.0), axis=-1, keepdims=True)
        inv_a = lax.rsqrt(jnp.maximum(ss_a, 1e-24))          # == 1 / max(||y||, 1e-12)
        inv_b = lax.rsqrt(jnp.maximum(ss_t - ss_a, 1e-24))
        y = y * jnp.where(first, inv_a, inv_b)

        if layer < num_layers - 1:           # ReLU + apply_bn between layers only
            y = jnp.maximum(y, 0.0)
            # BatchNorm1d(num_features=N) in training mode, per branch: normalize
            # each node over (batch, branch-features); biased var, gamma=1, beta=0.
            n_a = bb * half
            n_b = bb * (fout - half)
            s_t = jnp.sum(y, axis=(0, 2), keepdims=True)
            s_a = jnp.sum(jnp.where(first, y, 0.0), axis=(0, 2), keepdims=True)
            mean = jnp.where(first, s_a * (1.0 / n_a), (s_t - s_a) * (1.0 / n_b))
            d = y - mean
            dd = d * d
            v_t = jnp.sum(dd, axis=(0, 2), keepdims=True)
            v_a = jnp.sum(jnp.where(first, dd, 0.0), axis=(0, 2), keepdims=True)
            inv = jnp.where(first,
                            lax.rsqrt(v_a * (1.0 / n_a) + 1e-5),
                            lax.rsqrt((v_t - v_a) * (1.0 / n_b) + 1e-5))
            y = d * inv

        h = y.astype(jnp.bfloat16)           # bf16-resident between layers

    # h already equals torch.cat([x0_branch, x1_branch], dim=-1).
    # TODO(synk): util.sort_tensor_by_distance has no available definition; applied as identity.

    # --- head: Embed -> Encode gating -> ReLU -> Decode -> sigmoid ---
    # Embed(reshape(h, (B, N*E))): unrolled sum of per-node (bb,E)@(E,E) dots
    # accumulated directly in 'bf' layout (no output transpose, no cross-vreg reduce,
    # no in-kernel lane-dim reshape).
    e = jnp.dot(h[:, 0, :], we_ref[0], preferred_element_type=jnp.float32)
    for n in range(1, N):
        e = e + jnp.dot(h[:, n, :], we_ref[n], preferred_element_type=jnp.float32)
    e = e + be_ref[...]                                          # (bb, E)
    g = jnp.dot(e.astype(jnp.bfloat16), wenc_ref[...],
                preferred_element_type=jnp.float32)              # Encode (no bias)
    e = jnp.maximum(e * g, 0.0)                                  # gate + ReLU
    # Decode has out_dim == 1: VPU multiply + lane-reduce instead of an MXU pass.
    logit = jnp.sum(e * wd_ref[...], axis=-1, keepdims=True) + bd_ref[...]
    o_ref[...] = 1.0 / (1.0 + jnp.exp(-logit))                   # sigmoid, (bb, 1)


def fused_forward(adj, x_cat, conv_cat, head_params, *, batch_block=None):
    B, N, _ = x_cat.shape
    num_layers = len(conv_cat)
    we3, be, wenc, wd_row, bd = head_params

    # Training-mode BatchNorm couples the whole batch: exact reference semantics
    # require the batch block to be the full batch (default).  See header NOTE.
    bb = B if batch_block is None else batch_block
    assert B % bb == 0, "batch_block must divide the batch"
    grid = (B // bb,)

    flat = []
    for W, b in conv_cat:
        flat += [W, b]
    operands = ([adj.astype(jnp.bfloat16), x_cat.astype(jnp.bfloat16)]
                + flat + [we3, be, wenc, wd_row, bd])

    def batched_spec(a):
        # stream a (bb, ...) batch slice per grid step (auto double-buffered)
        blk = (bb,) + a.shape[1:]
        return pl.BlockSpec(blk, lambda i, _nd=a.ndim: (i,) + (0,) * (_nd - 1))

    def shared_spec(a):
        return pl.BlockSpec(a.shape, lambda i, _nd=a.ndim: (0,) * _nd)

    in_specs = ([batched_spec(adj), batched_spec(x_cat)]
                + [shared_spec(a) for a in operands[2:]])

    kernel = functools.partial(fused_gcn_kernel, num_layers=num_layers)
    return pl.pallas_call(
        kernel,
        out_shape=jax.ShapeDtypeStruct((B, 1), jnp.float32),
        grid=grid,
        in_specs=in_specs,
        out_specs=pl.BlockSpec((bb, 1), lambda i: (i, 0)),
        compiler_params=pltpu.CompilerParams(
            dimension_semantics=("parallel",),
            vmem_limit_bytes=48 * 1024 * 1024,
        ),
    )(*operands)


# ----------------------------------------------------------------------------
# Parameter construction (deterministic, shapes from __init__)
# ----------------------------------------------------------------------------
def _kaiming_uniform(key, fan_in, shape):
    bound = math.sqrt(6.0 / fan_in)
    return jax.random.uniform(key, shape, jnp.float32, -bound, bound)


def _linear_init(key, fan_in, shape_w, shape_b=None):
    bound = 1.0 / math.sqrt(fan_in)
    kw, kb = jax.random.split(key)
    W = jax.random.uniform(kw, shape_w, jnp.float32, -bound, bound)
    if shape_b is None:
        return W, None
    b = jax.random.uniform(kb, shape_b, jnp.float32, -bound, bound)
    return W, b


def build_conv_layer_params(key, in_dim, hid_dim, emb_dim, num_layers):
    dims = [(in_dim, hid_dim)] + [(hid_dim, hid_dim)] * (num_layers - 2) + [(hid_dim, emb_dim)]
    params = []
    for di, do in dims:
        key, kw = jax.random.split(key)
        W = _kaiming_uniform(kw, di, (di, do))      # kaiming_uniform_, relu gain
        b = jnp.zeros((1, do), jnp.float32)         # init.constant_(bias, 0.0)
        params.append((W, b))
    return key, params


def init_params(key, input_dim, hidden_dim, embedding_dim, deg_dim, node_dim, num_layers):
    key, conv_att = build_conv_layer_params(key, input_dim, hidden_dim // 2,
                                            embedding_dim // 2, num_layers)
    key, conv_deg = build_conv_layer_params(key, deg_dim, hidden_dim // 2,
                                            embedding_dim // 2, num_layers)
    key, k1, k2, k3 = jax.random.split(key, 4)
    # Weights stored as (in, out) so kernels compute x @ W (== PyTorch x @ W.T).
    embed_w, embed_b = _linear_init(k1, embedding_dim * node_dim,
                                    (embedding_dim * node_dim, embedding_dim),
                                    (1, embedding_dim))
    enc_w, _ = _linear_init(k2, embedding_dim, (embedding_dim, embedding_dim))
    dec_w, dec_b = _linear_init(k3, embedding_dim, (embedding_dim, 1), (1, 1))
    return dict(conv_att=conv_att, conv_deg=conv_deg,
                embed_w=embed_w, embed_b=embed_b,
                enc_w=enc_w, dec_w=dec_w, dec_b=dec_b)


def _block_diag(Wa, Wd):
    ia, oa = Wa.shape
    ib, ob = Wd.shape
    top = jnp.concatenate([Wa, jnp.zeros((ia, ob), Wa.dtype)], axis=1)
    bot = jnp.concatenate([jnp.zeros((ib, oa), Wd.dtype), Wd], axis=1)
    return jnp.concatenate([top, bot], axis=0)


def fuse_params(params, node_dim):
    """Merge per-branch conv weights block-diagonally; prep head weights for the kernel."""
    conv_cat = []
    for (Wa, ba), (Wd, bd) in zip(params["conv_att"], params["conv_deg"]):
        W = _block_diag(Wa, Wd).astype(jnp.bfloat16)        # (Fin_a+Fin_d, Fout_a+Fout_d)
        b = jnp.concatenate([ba, bd], axis=-1)              # (1, Fout) f32
        conv_cat.append((W, b))
    emb = params["embed_w"].shape[1]
    we3 = params["embed_w"].reshape(node_dim, emb, emb).astype(jnp.bfloat16)  # (N, E, E)
    head = (we3,
            params["embed_b"],                              # (1, E) f32
            params["enc_w"].astype(jnp.bfloat16),           # (E, E) bf16
            params["dec_w"].T,                              # (1, E) f32 (VPU decode)
            params["dec_b"])                                # (1, 1) f32
    return conv_cat, head


# ----------------------------------------------------------------------------
# Forward pass (concat=False -> add_self=True; bn=True; normalize=True)
# ----------------------------------------------------------------------------
@jax.jit
def gcn_encoder_forward(fused, x0, x1, adj):
    conv_cat, head = fused
    x_cat = jnp.concatenate([x0, x1], axis=-1)   # att ++ deg input features
    return fused_forward(adj, x_cat, conv_cat, head)


# ----------------------------------------------------------------------------
# Demo
# ----------------------------------------------------------------------------
if __name__ == "__main__":
    B = 2              # batch of graphs
    N = 8              # nodes per graph (== node_dim, required by Embed reshape)
    input_dim = 8      # attribute feature dim (att_dim > 0 path)
    deg_dim = 8        # degree feature dim
    hidden_dim = 32
    embedding_dim = 32
    num_layers = 3

    key = jax.random.PRNGKey(0)
    kp, k0, k1, ka = jax.random.split(key, 4)

    params = init_params(kp, input_dim, hidden_dim, embedding_dim,
                         deg_dim, N, num_layers)
    fused = fuse_params(params, node_dim=N)

    x0 = jax.random.normal(k0, (B, N, input_dim), jnp.float32)
    x1 = jax.random.normal(k1, (B, N, deg_dim), jnp.float32)
    # symmetric non-negative adjacency with self loops
    a = jax.random.uniform(ka, (B, N, N), jnp.float32)
    adj = 0.5 * (a + jnp.swapaxes(a, 1, 2)) + jnp.eye(N, dtype=jnp.float32)[None]

    out = gcn_encoder_forward(fused, x0, x1, adj)
    out = jax.block_until_ready(out)
    assert out.shape == (B, 1)
    assert bool(jnp.all(jnp.isfinite(out)))
    print("KERNEL_OK")
</pallas_src>

<mosaic_0001>
module attributes {stable_mosaic.version = 11 : i64} {
  func.func @fused_gcn_kernel(%arg0: i32, %arg1: memref<2x8x8xbf16, #tpu.memory_space<vmem>>, %arg2: memref<2x8x16xbf16, #tpu.memory_space<vmem>>, %arg3: memref<16x32xbf16, #tpu.memory_space<vmem>>, %arg4: memref<1x32xf32, #tpu.memory_space<vmem>>, %arg5: memref<32x32xbf16, #tpu.memory_space<vmem>>, %arg6: memref<1x32xf32, #tpu.memory_space<vmem>>, %arg7: memref<32x32xbf16, #tpu.memory_space<vmem>>, %arg8: memref<1x32xf32, #tpu.memory_space<vmem>>, %arg9: memref<8x32x32xbf16, #tpu.memory_space<vmem>>, %arg10: memref<1x32xf32, #tpu.memory_space<vmem>>, %arg11: memref<32x32xbf16, #tpu.memory_space<vmem>>, %arg12: memref<1x32xf32, #tpu.memory_space<vmem>>, %arg13: memref<1x1xf32, #tpu.memory_space<vmem>>, %arg14: memref<2x1xf32, #tpu.memory_space<vmem>>) attributes {dimension_semantics = [#tpu.dimension_semantics<parallel>], iteration_bounds = array<i64: 1>, scalar_prefetch = 0 : i64, scratch_operands = 0 : i64, tpu.core_type = #tpu.core_type<tc>, window_params = [{transform_indices = @transform_0, window_bounds = array<i64: 2, 8, 8>}, {transform_indices = @transform_1, window_bounds = array<i64: 2, 8, 16>}, {pipeline_mode = #tpu.pipeline_mode<synchronous>, transform_indices = @transform_2, window_bounds = array<i64: 16, 32>}, {pipeline_mode = #tpu.pipeline_mode<synchronous>, transform_indices = @transform_3, window_bounds = array<i64: 1, 32>}, {pipeline_mode = #tpu.pipeline_mode<synchronous>, transform_indices = @transform_4, window_bounds = array<i64: 32, 32>}, {pipeline_mode = #tpu.pipeline_mode<synchronous>, transform_indices = @transform_5, window_bounds = array<i64: 1, 32>}, {pipeline_mode = #tpu.pipeline_mode<synchronous>, transform_indices = @transform_6, window_bounds = array<i64: 32, 32>}, {pipeline_mode = #tpu.pipeline_mode<synchronous>, transform_indices = @transform_7, window_bounds = array<i64: 1, 32>}, {pipeline_mode = #tpu.pipeline_mode<synchronous>, transform_indices = @transform_8, window_bounds = array<i64: 8, 32, 32>}, {pipeline_mode = #tpu.pipeline_mode<synchronous>, transform_indices = @transform_9, window_bounds = array<i64: 1, 32>}, {pipeline_mode = #tpu.pipeline_mode<synchronous>, transform_indices = @transform_10, window_bounds = array<i64: 32, 32>}, {pipeline_mode = #tpu.pipeline_mode<synchronous>, transform_indices = @transform_11, window_bounds = array<i64: 1, 32>}, {pipeline_mode = #tpu.pipeline_mode<synchronous>, transform_indices = @transform_12, window_bounds = array<i64: 1, 1>}, {transform_indices = @transform_13, window_bounds = array<i64: 2, 1>}]} {
    %c0 = arith.constant 0 : index
    %c0_0 = arith.constant 0 : index
    %c0_1 = arith.constant 0 : index
    %0 = vector.load %arg1[%c0, %c0_0, %c0_1] : memref<2x8x8xbf16, #tpu.memory_space<vmem>>, vector<2x8x8xbf16>
    %c0_2 = arith.constant 0 : index
    %c0_3 = arith.constant 0 : index
    %c0_4 = arith.constant 0 : index
    %1 = vector.load %arg2[%c0_2, %c0_3, %c0_4] : memref<2x8x16xbf16, #tpu.memory_space<vmem>>, vector<2x8x16xbf16>
    %c0_5 = arith.constant 0 : index
    %c0_6 = arith.constant 0 : index
    %2 = vector.load %arg3[%c0_5, %c0_6] : memref<16x32xbf16, #tpu.memory_space<vmem>>, vector<16x32xbf16>
    %c0_7 = arith.constant 0 : index
    %c0_8 = arith.constant 0 : index
    %3 = vector.load %arg4[%c0_7, %c0_8] : memref<1x32xf32, #tpu.memory_space<vmem>>, vector<1x32xf32>
    %4 = tpu.iota {dimensions = array<i32: 2>} : vector<1x1x32xi32>
    %c16_i32 = arith.constant 16 : i32
    %5 = vector.broadcast %c16_i32 : i32 to vector<1x1x32xi32>
    %6 = arith.cmpi slt, %4, %5 : vector<1x1x32xi32>
    "tpu.trace_start"() <{level = 10 : i32, message = "bij,bjf->bif"}> : () -> ()
    %cst = arith.constant dense<0.000000e+00> : vector<2x8x16xf32>
    %7 = tpu.matmul %0, %1, %cst {dimension_numbers = #tpu.dot_dimension_numbers<[2], [1], [1], [2], [0, 0, 0, 1, 1, 2], [0], [0]>} : vector<2x8x8xbf16>, vector<2x8x16xbf16>, vector<2x8x16xf32> -> vector<2x8x16xf32>
    "tpu.trace_stop"() : () -> ()
    %8 = arith.extf %1 : vector<2x8x16xbf16> to vector<2x8x16xf32>
    %9 = arith.addf %7, %8 : vector<2x8x16xf32>
    %10 = arith.truncf %9 : vector<2x8x16xf32> to vector<2x8x16xbf16>
    %11 = vector.shape_cast %10 : vector<2x8x16xbf16> to vector<16x16xbf16>
    %cst_9 = arith.constant dense<0.000000e+00> : vector<16x32xf32>
    %12 = tpu.matmul %11, %2, %cst_9 {dimension_numbers = #tpu.dot_dimension_numbers<[1], [0], [0], [1], [0, 0, 1, 1], [], []>} : vector<16x16xbf16>, vector<16x32xbf16>, vector<16x32xf32> -> vector<16x32xf32>
    %13 = vector.shape_cast %12 : vector<16x32xf32> to vector<2x8x32xf32>
    %14 = vector.shape_cast %3 : vector<1x32xf32> to vector<1x1x32xf32>
    %15 = vector.broadcast %14 : vector<1x1x32xf32> to vector<2x8x32xf32>
    %16 = arith.addf %13, %15 : vector<2x8x32xf32>
    %17 = arith.mulf %16, %16 : vector<2x8x32xf32>
    %cst_10 = arith.constant dense<0.000000e+00> : vector<2x8xf32>
    %18 = vector.multi_reduction <add>, %17, %cst_10 [2] : vector<2x8x32xf32> to vector<2x8xf32>
    %19 = vector.shape_cast %18 : vector<2x8xf32> to vector<2x8x1xf32>
    %cst_11 = arith.constant 0.000000e+00 : f32
    %20 = vector.shape_cast %6 : vector<1x1x32xi1> to vector<1x1x32xi1>
    %21 = vector.broadcast %20 : vector<1x1x32xi1> to vector<2x8x32xi1>
    %22 = vector.broadcast %cst_11 : f32 to vector<2x8x32xf32>
    %23 = arith.select %21, %17, %22 : vector<2x8x32xi1>, vector<2x8x32xf32>
    %cst_12 = arith.constant dense<0.000000e+00> : vector<2x8xf32>
    %24 = vector.multi_reduction <add>, %23, %cst_12 [2] : vector<2x8x32xf32> to vector<2x8xf32>
    %25 = vector.shape_cast %24 : vector<2x8xf32> to vector<2x8x1xf32>
    %cst_13 = arith.constant 1.000000e-24 : f32
    %26 = vector.broadcast %cst_13 : f32 to vector<2x8x1xf32>
    %27 = arith.maximumf %25, %26 : vector<2x8x1xf32>
    %28 = math.rsqrt %27 : vector<2x8x1xf32>
    %29 = arith.subf %19, %25 : vector<2x8x1xf32>
    %cst_14 = arith.constant 1.000000e-24 : f32
    %30 = vector.broadcast %cst_14 : f32 to vector<2x8x1xf32>
    %31 = arith.maximumf %29, %30 : vector<2x8x1xf32>
    %32 = math.rsqrt %31 : vector<2x8x1xf32>
    %33 = vector.shape_cast %6 : vector<1x1x32xi1> to vector<1x1x32xi1>
    %34 = vector.broadcast %33 : vector<1x1x32xi1> to vector<2x8x32xi1>
    %35 = vector.shape_cast %28 : vector<2x8x1xf32> to vector<2x8x1xf32>
    %36 = vector.broadcast %35 : vector<2x8x1xf32> to vector<2x8x32xf32>
    %37 = vector.shape_cast %32 : vector<2x8x1xf32> to vector<2x8x1xf32>
    %38 = vector.broadcast %37 : vector<2x8x1xf32> to vector<2x8x32xf32>
    %39 = arith.select %34, %36, %38 : vector<2x8x32xi1>, vector<2x8x32xf32>
    %40 = arith.mulf %16, %39 : vector<2x8x32xf32>
    %cst_15 = arith.constant 0.000000e+00 : f32
    %41 = vector.broadcast %cst_15 : f32 to vector<2x8x32xf32>
    %42 = arith.maximumf %40, %41 : vector<2x8x32xf32>
    %cst_16 = arith.constant dense<0.000000e+00> : vector<8xf32>
    %43 = vector.multi_reduction <add>, %42, %cst_16 [0, 2] : vector<2x8x32xf32> to vector<8xf32>
    %44 = vector.shape_cast %43 : vector<8xf32> to vector<1x8x1xf32>
    %cst_17 = arith.constant 0.000000e+00 : f32
    %45 = vector.shape_cast %6 : vector<1x1x32xi1> to vector<1x1x32xi1>
    %46 = vector.broadcast %45 : vector<1x1x32xi1> to vector<2x8x32xi1>
    %47 = vector.broadcast %cst_17 : f32 to vector<2x8x32xf32>
    %48 = arith.select %46, %42, %47 : vector<2x8x32xi1>, vector<2x8x32xf32>
    %cst_18 = arith.constant dense<0.000000e+00> : vector<8xf32>
    %49 = vector.multi_reduction <add>, %48, %cst_18 [0, 2] : vector<2x8x32xf32> to vector<8xf32>
    %50 = vector.shape_cast %49 : vector<8xf32> to vector<1x8x1xf32>
    %cst_19 = arith.constant 3.125000e-02 : f32
    %51 = vector.broadcast %cst_19 : f32 to vector<1x8x1xf32>
    %52 = arith.mulf %50, %51 : vector<1x8x1xf32>
    %53 = arith.subf %44, %50 : vector<1x8x1xf32>
    %cst_20 = arith.constant 3.125000e-02 : f32
    %54 = vector.broadcast %cst_20 : f32 to vector<1x8x1xf32>
    %55 = arith.mulf %53, %54 : vector<1x8x1xf32>
    %56 = vector.shape_cast %6 : vector<1x1x32xi1> to vector<1x1x32xi1>
    %57 = vector.broadcast %56 : vector<1x1x32xi1> to vector<1x8x32xi1>
    %58 = vector.shape_cast %52 : vector<1x8x1xf32> to vector<1x8x1xf32>
    %59 = vector.broadcast %58 : vector<1x8x1xf32> to vector<1x8x32xf32>
    %60 = vector.shape_cast %55 : vector<1x8x1xf32> to vector<1x8x1xf32>
    %61 = vector.broadcast %60 : vector<1x8x1xf32> to vector<1x8x32xf32>
    %62 = arith.select %57, %59, %61 : vector<1x8x32xi1>, vector<1x8x32xf32>
    %63 = vector.broadcast %62 : vector<1x8x32xf32> to vector<2x8x32xf32>
    %64 = arith.subf %42, %63 : vector<2x8x32xf32>
    %65 = arith.mulf %64, %64 : vector<2x8x32xf32>
    %cst_21 = arith.constant dense<0.000000e+00> : vector<8xf32>
    %66 = vector.multi_reduction <add>, %65, %cst_21 [0, 2] : vector<2x8x32xf32> to vector<8xf32>
    %67 = vector.shape_cast %66 : vector<8xf32> to vector<1x8x1xf32>
    %cst_22 = arith.constant 0.000000e+00 : f32
    %68 = vector.shape_cast %6 : vector<1x1x32xi1> to vector<1x1x32xi1>
    %69 = vector.broadcast %68 : vector<1x1x32xi1> to vector<2x8x32xi1>
    %70 = vector.broadcast %cst_22 : f32 to vector<2x8x32xf32>
    %71 = arith.select %69, %65, %70 : vector<2x8x32xi1>, vector<2x8x32xf32>
    %cst_23 = arith.constant dense<0.000000e+00> : vector<8xf32>
    %72 = vector.multi_reduction <add>, %71, %cst_23 [0, 2] : vector<2x8x32xf32> to vector<8xf32>
    %73 = vector.shape_cast %72 : vector<8xf32> to vector<1x8x1xf32>
    %cst_24 = arith.constant 3.125000e-02 : f32
    %74 = vector.broadcast %cst_24 : f32 to vector<1x8x1xf32>
    %75 = arith.mulf %73, %74 : vector<1x8x1xf32>
    %cst_25 = arith.constant 9.99999974E-6 : f32
    %76 = vector.broadcast %cst_25 : f32 to vector<1x8x1xf32>
    %77 = arith.addf %75, %76 : vector<1x8x1xf32>
    %78 = math.rsqrt %77 : vector<1x8x1xf32>
    %79 = arith.subf %67, %73 : vector<1x8x1xf32>
    %cst_26 = arith.constant 3.125000e-02 : f32
    %80 = vector.broadcast %cst_26 : f32 to vector<1x8x1xf32>
    %81 = arith.mulf %79, %80 : vector<1x8x1xf32>
    %cst_27 = arith.constant 9.99999974E-6 : f32
    %82 = vector.broadcast %cst_27 : f32 to vector<1x8x1xf32>
    %83 = arith.addf %81, %82 : vector<1x8x1xf32>
    %84 = math.rsqrt %83 : vector<1x8x1xf32>
    %85 = vector.shape_cast %6 : vector<1x1x32xi1> to vector<1x1x32xi1>
    %86 = vector.broadcast %85 : vector<1x1x32xi1> to vector<1x8x32xi1>
    %87 = vector.shape_cast %78 : vector<1x8x1xf32> to vector<1x8x1xf32>
    %88 = vector.broadcast %87 : vector<1x8x1xf32> to vector<1x8x32xf32>
    %89 = vector.shape_cast %84 : vector<1x8x1xf32> to vector<1x8x1xf32>
    %90 = vector.broadcast %89 : vector<1x8x1xf32> to vector<1x8x32xf32>
    %91 = arith.select %86, %88, %90 : vector<1x8x32xi1>, vector<1x8x32xf32>
    %92 = vector.broadcast %91 : vector<1x8x32xf32> to vector<2x8x32xf32>
    %93 = arith.mulf %64, %92 : vector<2x8x32xf32>
    %94 = arith.truncf %93 : vector<2x8x32xf32> to vector<2x8x32xbf16>
    %c0_28 = arith.constant 0 : index
    %c0_29 = arith.constant 0 : index
    %95 = vector.load %arg5[%c0_28, %c0_29] : memref<32x32xbf16, #tpu.memory_space<vmem>>, vector<32x32xbf16>
    %c0_30 = arith.constant 0 : index
    %c0_31 = arith.constant 0 : index
    %96 = vector.load %arg6[%c0_30, %c0_31] : memref<1x32xf32, #tpu.memory_space<vmem>>, vector<1x32xf32>
    %97 = tpu.iota {dimensions = array<i32: 2>} : vector<1x1x32xi32>
    %c16_i32_32 = arith.constant 16 : i32
    %98 = vector.broadcast %c16_i32_32 : i32 to vector<1x1x32xi32>
    %99 = arith.cmpi slt, %97, %98 : vector<1x1x32xi32>
    "tpu.trace_start"() <{level = 10 : i32, message = "bij,bjf->bif"}> : () -> ()
    %cst_33 = arith.constant dense<0.000000e+00> : vector<2x8x32xf32>
    %100 = tpu.matmul %0, %94, %cst_33 {dimension_numbers = #tpu.dot_dimension_numbers<[2], [1], [1], [2], [0, 0, 0, 1, 1, 2], [0], [0]>} : vector<2x8x8xbf16>, vector<2x8x32xbf16>, vector<2x8x32xf32> -> vector<2x8x32xf32>
    "tpu.trace_stop"() : () -> ()
    %101 = arith.extf %94 : vector<2x8x32xbf16> to vector<2x8x32xf32>
    %102 = arith.addf %100, %101 : vector<2x8x32xf32>
    %103 = arith.truncf %102 : vector<2x8x32xf32> to vector<2x8x32xbf16>
    %104 = vector.shape_cast %103 : vector<2x8x32xbf16> to vector<16x32xbf16>
    %cst_34 = arith.constant dense<0.000000e+00> : vector<16x32xf32>
    %105 = tpu.matmul %104, %95, %cst_34 {dimension_numbers = #tpu.dot_dimension_numbers<[1], [0], [0], [1], [0, 0, 1, 1], [], []>} : vector<16x32xbf16>, vector<32x32xbf16>, vector<16x32xf32> -> vector<16x32xf32>
    %106 = vector.shape_cast %105 : vector<16x32xf32> to vector<2x8x32xf32>
    %107 = vector.shape_cast %96 : vector<1x32xf32> to vector<1x1x32xf32>
    %108 = vector.broadcast %107 : vector<1x1x32xf32> to vector<2x8x32xf32>
    %109 = arith.addf %106, %108 : vector<2x8x32xf32>
    %110 = arith.mulf %109, %109 : vector<2x8x32xf32>
    %cst_35 = arith.constant dense<0.000000e+00> : vector<2x8xf32>
    %111 = vector.multi_reduction <add>, %110, %cst_35 [2] : vector<2x8x32xf32> to vector<2x8xf32>
    %112 = vector.shape_cast %111 : vector<2x8xf32> to vector<2x8x1xf32>
    %cst_36 = arith.constant 0.000000e+00 : f32
    %113 = vector.shape_cast %99 : vector<1x1x32xi1> to vector<1x1x32xi1>
    %114 = vector.broadcast %113 : vector<1x1x32xi1> to vector<2x8x32xi1>
    %115 = vector.broadcast %cst_36 : f32 to vector<2x8x32xf32>
    %116 = arith.select %114, %110, %115 : vector<2x8x32xi1>, vector<2x8x32xf32>
    %cst_37 = arith.constant dense<0.000000e+00> : vector<2x8xf32>
    %117 = vector.multi_reduction <add>, %116, %cst_37 [2] : vector<2x8x32xf32> to vector<2x8xf32>
    %118 = vector.shape_cast %117 : vector<2x8xf32> to vector<2x8x1xf32>
    %cst_38 = arith.constant 1.000000e-24 : f32
    %119 = vector.broadcast %cst_38 : f32 to vector<2x8x1xf32>
    %120 = arith.maximumf %118, %119 : vector<2x8x1xf32>
    %121 = math.rsqrt %120 : vector<2x8x1xf32>
    %122 = arith.subf %112, %118 : vector<2x8x1xf32>
    %cst_39 = arith.constant 1.000000e-24 : f32
    %123 = vector.broadcast %cst_39 : f32 to vector<2x8x1xf32>
    %124 = arith.maximumf %122, %123 : vector<2x8x1xf32>
    %125 = math.rsqrt %124 : vector<2x8x1xf32>
    %126 = vector.shape_cast %99 : vector<1x1x32xi1> to vector<1x1x32xi1>
    %127 = vector.broadcast %126 : vector<1x1x32xi1> to vector<2x8x32xi1>
    %128 = vector.shape_cast %121 : vector<2x8x1xf32> to vector<2x8x1xf32>
    %129 = vector.broadcast %128 : vector<2x8x1xf32> to vector<2x8x32xf32>
    %130 = vector.shape_cast %125 : vector<2x8x1xf32> to vector<2x8x1xf32>
    %131 = vector.broadcast %130 : vector<2x8x1xf32> to vector<2x8x32xf32>
    %132 = arith.select %127, %129, %131 : vector<2x8x32xi1>, vector<2x8x32xf32>
    %133 = arith.mulf %109, %132 : vector<2x8x32xf32>
    %cst_40 = arith.constant 0.000000e+00 : f32
    %134 = vector.broadcast %cst_40 : f32 to vector<2x8x32xf32>
    %135 = arith.maximumf %133, %134 : vector<2x8x32xf32>
    %cst_41 = arith.constant dense<0.000000e+00> : vector<8xf32>
    %136 = vector.multi_reduction <add>, %135, %cst_41 [0, 2] : vector<2x8x32xf32> to vector<8xf32>
    %137 = vector.shape_cast %136 : vector<8xf32> to vector<1x8x1xf32>
    %cst_42 = arith.constant 0.000000e+00 : f32
    %138 = vector.shape_cast %99 : vector<1x1x32xi1> to vector<1x1x32xi1>
    %139 = vector.broadcast %138 : vector<1x1x32xi1> to vector<2x8x32xi1>
    %140 = vector.broadcast %cst_42 : f32 to vector<2x8x32xf32>
    %141 = arith.select %139, %135, %140 : vector<2x8x32xi1>, vector<2x8x32xf32>
    %cst_43 = arith.constant dense<0.000000e+00> : vector<8xf32>
    %142 = vector.multi_reduction <add>, %141, %cst_43 [0, 2] : vector<2x8x32xf32> to vector<8xf32>
    %143 = vector.shape_cast %142 : vector<8xf32> to vector<1x8x1xf32>
    %cst_44 = arith.constant 3.125000e-02 : f32
    %144 = vector.broadcast %cst_44 : f32 to vector<1x8x1xf32>
    %145 = arith.mulf %143, %144 : vector<1x8x1xf32>
    %146 = arith.subf %137, %143 : vector<1x8x1xf32>
    %cst_45 = arith.constant 3.125000e-02 : f32
    %147 = vector.broadcast %cst_45 : f32 to vector<1x8x1xf32>
    %148 = arith.mulf %146, %147 : vector<1x8x1xf32>
    %149 = vector.shape_cast %99 : vector<1x1x32xi1> to vector<1x1x32xi1>
    %150 = vector.broadcast %149 : vector<1x1x32xi1> to vector<1x8x32xi1>
    %151 = vector.shape_cast %145 : vector<1x8x1xf32> to vector<1x8x1xf32>
    %152 = vector.broadcast %151 : vector<1x8x1xf32> to vector<1x8x32xf32>
    %153 = vector.shape_cast %148 : vector<1x8x1xf32> to vector<1x8x1xf32>
    %154 = vector.broadcast %153 : vector<1x8x1xf32> to vector<1x8x32xf32>
    %155 = arith.select %150, %152, %154 : vector<1x8x32xi1>, vector<1x8x32xf32>
    %156 = vector.broadcast %155 : vector<1x8x32xf32> to vector<2x8x32xf32>
    %157 = arith.subf %135, %156 : vector<2x8x32xf32>
    %158 = arith.mulf %157, %157 : vector<2x8x32xf32>
    %cst_46 = arith.constant dense<0.000000e+00> : vector<8xf32>
    %159 = vector.multi_reduction <add>, %158, %cst_46 [0, 2] : vector<2x8x32xf32> to vector<8xf32>
    %160 = vector.shape_cast %159 : vector<8xf32> to vector<1x8x1xf32>
    %cst_47 = arith.constant 0.000000e+00 : f32
    %161 = vector.shape_cast %99 : vector<1x1x32xi1> to vector<1x1x32xi1>
    %162 = vector.broadcast %161 : vector<1x1x32xi1> to vector<2x8x32xi1>
    %163 = vector.broadcast %cst_47 : f32 to vector<2x8x32xf32>
    %164 = arith.select %162, %158, %163 : vector<2x8x32xi1>, vector<2x8x32xf32>
    %cst_48 = arith.constant dense<0.000000e+00> : vector<8xf32>
    %165 = vector.multi_reduction <add>, %164, %cst_48 [0, 2] : vector<2x8x32xf32> to vector<8xf32>
    %166 = vector.shape_cast %165 : vector<8xf32> to vector<1x8x1xf32>
    %cst_49 = arith.constant 3.125000e-02 : f32
    %167 = vector.broadcast %cst_49 : f32 to vector<1x8x1xf32>
    %168 = arith.mulf %166, %167 : vector<1x8x1xf32>
    %cst_50 = arith.constant 9.99999974E-6 : f32
    %169 = vector.broadcast %cst_50 : f32 to vector<1x8x1xf32>
    %170 = arith.addf %168, %169 : vector<1x8x1xf32>
    %171 = math.rsqrt %170 : vector<1x8x1xf32>
    %172 = arith.subf %160, %166 : vector<1x8x1xf32>
    %cst_51 = arith.constant 3.125000e-02 : f32
    %173 = vector.broadcast %cst_51 : f32 to vector<1x8x1xf32>
    %174 = arith.mulf %172, %173 : vector<1x8x1xf32>
    %cst_52 = arith.constant 9.99999974E-6 : f32
    %175 = vector.broadcast %cst_52 : f32 to vector<1x8x1xf32>
    %176 = arith.addf %174, %175 : vector<1x8x1xf32>
    %177 = math.rsqrt %176 : vector<1x8x1xf32>
    %178 = vector.shape_cast %99 : vector<1x1x32xi1> to vector<1x1x32xi1>
    %179 = vector.broadcast %178 : vector<1x1x32xi1> to vector<1x8x32xi1>
    %180 = vector.shape_cast %171 : vector<1x8x1xf32> to vector<1x8x1xf32>
    %181 = vector.broadcast %180 : vector<1x8x1xf32> to vector<1x8x32xf32>
    %182 = vector.shape_cast %177 : vector<1x8x1xf32> to vector<1x8x1xf32>
    %183 = vector.broadcast %182 : vector<1x8x1xf32> to vector<1x8x32xf32>
    %184 = arith.select %179, %181, %183 : vector<1x8x32xi1>, vector<1x8x32xf32>
    %185 = vector.broadcast %184 : vector<1x8x32xf32> to vector<2x8x32xf32>
    %186 = arith.mulf %157, %185 : vector<2x8x32xf32>
    %187 = arith.truncf %186 : vector<2x8x32xf32> to vector<2x8x32xbf16>
    %c0_53 = arith.constant 0 : index
    %c0_54 = arith.constant 0 : index
    %188 = vector.load %arg7[%c0_53, %c0_54] : memref<32x32xbf16, #tpu.memory_space<vmem>>, vector<32x32xbf16>
    %c0_55 = arith.constant 0 : index
    %c0_56 = arith.constant 0 : index
    %189 = vector.load %arg8[%c0_55, %c0_56] : memref<1x32xf32, #tpu.memory_space<vmem>>, vector<1x32xf32>
    %190 = tpu.iota {dimensions = array<i32: 2>} : vector<1x1x32xi32>
    %c16_i32_57 = arith.constant 16 : i32
    %191 = vector.broadcast %c16_i32_57 : i32 to vector<1x1x32xi32>
    %192 = arith.cmpi slt, %190, %191 : vector<1x1x32xi32>
    "tpu.trace_start"() <{level = 10 : i32, message = "bij,bjf->bif"}> : () -> ()
    %cst_58 = arith.constant dense<0.000000e+00> : vector<2x8x32xf32>
    %193 = tpu.matmul %0, %187, %cst_58 {dimension_numbers = #tpu.dot_dimension_numbers<[2], [1], [1], [2], [0, 0, 0, 1, 1, 2], [0], [0]>} : vector<2x8x8xbf16>, vector<2x8x32xbf16>, vector<2x8x32xf32> -> vector<2x8x32xf32>
    "tpu.trace_stop"() : () -> ()
    %194 = arith.extf %187 : vector<2x8x32xbf16> to vector<2x8x32xf32>
    %195 = arith.addf %193, %194 : vector<2x8x32xf32>
    %196 = arith.truncf %195 : vector<2x8x32xf32> to vector<2x8x32xbf16>
    %197 = vector.shape_cast %196 : vector<2x8x32xbf16> to vector<16x32xbf16>
    %cst_59 = arith.constant dense<0.000000e+00> : vector<16x32xf32>
    %198 = tpu.matmul %197, %188, %cst_59 {dimension_numbers = #tpu.dot_dimension_numbers<[1], [0], [0], [1], [0, 0, 1, 1], [], []>} : vector<16x32xbf16>, vector<32x32xbf16>, vector<16x32xf32> -> vector<16x32xf32>
    %199 = vector.shape_cast %198 : vector<16x32xf32> to vector<2x8x32xf32>
    %200 = vector.shape_cast %189 : vector<1x32xf32> to vector<1x1x32xf32>
    %201 = vector.broadcast %200 : vector<1x1x32xf32> to vector<2x8x32xf32>
    %202 = arith.addf %199, %201 : vector<2x8x32xf32>
    %203 = arith.mulf %202, %202 : vector<2x8x32xf32>
    %cst_60 = arith.constant dense<0.000000e+00> : vector<2x8xf32>
    %204 = vector.multi_reduction <add>, %203, %cst_60 [2] : vector<2x8x32xf32> to vector<2x8xf32>
    %205 = vector.shape_cast %204 : vector<2x8xf32> to vector<2x8x1xf32>
    %cst_61 = arith.constant 0.000000e+00 : f32
    %206 = vector.shape_cast %192 : vector<1x1x32xi1> to vector<1x1x32xi1>
    %207 = vector.broadcast %206 : vector<1x1x32xi1> to vector<2x8x32xi1>
    %208 = vector.broadcast %cst_61 : f32 to vector<2x8x32xf32>
    %209 = arith.select %207, %203, %208 : vector<2x8x32xi1>, vector<2x8x32xf32>
    %cst_62 = arith.constant dense<0.000000e+00> : vector<2x8xf32>
    %210 = vector.multi_reduction <add>, %209, %cst_62 [2] : vector<2x8x32xf32> to vector<2x8xf32>
    %211 = vector.shape_cast %210 : vector<2x8xf32> to vector<2x8x1xf32>
    %cst_63 = arith.constant 1.000000e-24 : f32
    %212 = vector.broadcast %cst_63 : f32 to vector<2x8x1xf32>
    %213 = arith.maximumf %211, %212 : vector<2x8x1xf32>
    %214 = math.rsqrt %213 : vector<2x8x1xf32>
    %215 = arith.subf %205, %211 : vector<2x8x1xf32>
    %cst_64 = arith.constant 1.000000e-24 : f32
    %216 = vector.broadcast %cst_64 : f32 to vector<2x8x1xf32>
    %217 = arith.maximumf %215, %216 : vector<2x8x1xf32>
    %218 = math.rsqrt %217 : vector<2x8x1xf32>
    %219 = vector.shape_cast %192 : vector<1x1x32xi1> to vector<1x1x32xi1>
    %220 = vector.broadcast %219 : vector<1x1x32xi1> to vector<2x8x32xi1>
    %221 = vector.shape_cast %214 : vector<2x8x1xf32> to vector<2x8x1xf32>
    %222 = vector.broadcast %221 : vector<2x8x1xf32> to vector<2x8x32xf32>
    %223 = vector.shape_cast %218 : vector<2x8x1xf32> to vector<2x8x1xf32>
    %224 = vector.broadcast %223 : vector<2x8x1xf32> to vector<2x8x32xf32>
    %225 = arith.select %220, %222, %224 : vector<2x8x32xi1>, vector<2x8x32xf32>
    %226 = arith.mulf %202, %225 : vector<2x8x32xf32>
    %227 = arith.truncf %226 : vector<2x8x32xf32> to vector<2x8x32xbf16>
    %228 = vector.extract_strided_slice %227 {offsets = [0, 0, 0], sizes = [2, 1, 32], strides = [1, 1, 1]} : vector<2x8x32xbf16> to vector<2x1x32xbf16>
    %229 = vector.shape_cast %228 : vector<2x1x32xbf16> to vector<2x32xbf16>
    %c0_65 = arith.constant 0 : index
    %c0_66 = arith.constant 0 : index
    %c0_67 = arith.constant 0 : index
    %230 = vector.load %arg9[%c0_65, %c0_66, %c0_67] : memref<8x32x32xbf16, #tpu.memory_space<vmem>>, vector<1x32x32xbf16>
    %231 = vector.shape_cast %230 : vector<1x32x32xbf16> to vector<32x32xbf16>
    %cst_68 = arith.constant dense<0.000000e+00> : vector<2x32xf32>
    %232 = tpu.matmul %229, %231, %cst_68 {dimension_numbers = #tpu.dot_dimension_numbers<[1], [0], [0], [1], [0, 0, 1, 1], [], []>} : vector<2x32xbf16>, vector<32x32xbf16>, vector<2x32xf32> -> vector<2x32xf32>
    %233 = vector.extract_strided_slice %227 {offsets = [0, 1, 0], sizes = [2, 1, 32], strides = [1, 1, 1]} : vector<2x8x32xbf16> to vector<2x1x32xbf16>
    %234 = vector.shape_cast %233 : vector<2x1x32xbf16> to vector<2x32xbf16>
    %c1 = arith.constant 1 : index
    %c0_69 = arith.constant 0 : index
    %c0_70 = arith.constant 0 : index
    %235 = vector.load %arg9[%c1, %c0_69, %c0_70] : memref<8x32x32xbf16, #tpu.memory_space<vmem>>, vector<1x32x32xbf16>
    %236 = vector.shape_cast %235 : vector<1x32x32xbf16> to vector<32x32xbf16>
    %cst_71 = arith.constant dense<0.000000e+00> : vector<2x32xf32>
    %237 = tpu.matmul %234, %236, %cst_71 {dimension_numbers = #tpu.dot_dimension_numbers<[1], [0], [0], [1], [0, 0, 1, 1], [], []>} : vector<2x32xbf16>, vector<32x32xbf16>, vector<2x32xf32> -> vector<2x32xf32>
    %238 = arith.addf %232, %237 : vector<2x32xf32>
    %239 = vector.extract_strided_slice %227 {offsets = [0, 2, 0], sizes = [2, 1, 32], strides = [1, 1, 1]} : vector<2x8x32xbf16> to vector<2x1x32xbf16>
    %240 = vector.shape_cast %239 : vector<2x1x32xbf16> to vector<2x32xbf16>
    %c2 = arith.constant 2 : index
    %c0_72 = arith.constant 0 : index
    %c0_73 = arith.constant 0 : index
    %241 = vector.load %arg9[%c2, %c0_72, %c0_73] : memref<8x32x32xbf16, #tpu.memory_space<vmem>>, vector<1x32x32xbf16>
    %242 = vector.shape_cast %241 : vector<1x32x32xbf16> to vector<32x32xbf16>
    %cst_74 = arith.constant dense<0.000000e+00> : vector<2x32xf32>
    %243 = tpu.matmul %240, %242, %cst_74 {dimension_numbers = #tpu.dot_dimension_numbers<[1], [0], [0], [1], [0, 0, 1, 1], [], []>} : vector<2x32xbf16>, vector<32x32xbf16>, vector<2x32xf32> -> vector<2x32xf32>
    %244 = arith.addf %238, %243 : vector<2x32xf32>
    %245 = vector.extract_strided_slice %227 {offsets = [0, 3, 0], sizes = [2, 1, 32], strides = [1, 1, 1]} : vector<2x8x32xbf16> to vector<2x1x32xbf16>
    %246 = vector.shape_cast %245 : vector<2x1x32xbf16> to vector<2x32xbf16>
    %c3 = arith.constant 3 : index
    %c0_75 = arith.constant 0 : index
    %c0_76 = arith.constant 0 : index
    %247 = vector.load %arg9[%c3, %c0_75, %c0_76] : memref<8x32x32xbf16, #tpu.memory_space<vmem>>, vector<1x32x32xbf16>
    %248 = vector.shape_cast %247 : vector<1x32x32xbf16> to vector<32x32xbf16>
    %cst_77 = arith.constant dense<0.000000e+00> : vector<2x32xf32>
    %249 = tpu.matmul %246, %248, %cst_77 {dimension_numbers = #tpu.dot_dimension_numbers<[1], [0], [0], [1], [0, 0, 1, 1], [], []>} : vector<2x32xbf16>, vector<32x32xbf16>, vector<2x32xf32> -> vector<2x32xf32>
    %250 = arith.addf %244, %249 : vector<2x32xf32>
    %251 = vector.extract_strided_slice %227 {offsets = [0, 4, 0], sizes = [2, 1, 32], strides = [1, 1, 1]} : vector<2x8x32xbf16> to vector<2x1x32xbf16>
    %252 = vector.shape_cast %251 : vector<2x1x32xbf16> to vector<2x32xbf16>
    %c4 = arith.constant 4 : index
    %c0_78 = arith.constant 0 : index
    %c0_79 = arith.constant 0 : index
    %253 = vector.load %arg9[%c4, %c0_78, %c0_79] : memref<8x32x32xbf16, #tpu.memory_space<vmem>>, vector<1x32x32xbf16>
    %254 = vector.shape_cast %253 : vector<1x32x32xbf16> to vector<32x32xbf16>
    %cst_80 = arith.constant dense<0.000000e+00> : vector<2x32xf32>
    %255 = tpu.matmul %252, %254, %cst_80 {dimension_numbers = #tpu.dot_dimension_numbers<[1], [0], [0], [1], [0, 0, 1, 1], [], []>} : vector<2x32xbf16>, vector<32x32xbf16>, vector<2x32xf32> -> vector<2x32xf32>
    %256 = arith.addf %250, %255 : vector<2x32xf32>
    %257 = vector.extract_strided_slice %227 {offsets = [0, 5, 0], sizes = [2, 1, 32], strides = [1, 1, 1]} : vector<2x8x32xbf16> to vector<2x1x32xbf16>
    %258 = vector.shape_cast %257 : vector<2x1x32xbf16> to vector<2x32xbf16>
    %c5 = arith.constant 5 : index
    %c0_81 = arith.constant 0 : index
    %c0_82 = arith.constant 0 : index
    %259 = vector.load %arg9[%c5, %c0_81, %c0_82] : memref<8x32x32xbf16, #tpu.memory_space<vmem>>, vector<1x32x32xbf16>
    %260 = vector.shape_cast %259 : vector<1x32x32xbf16> to vector<32x32xbf16>
    %cst_83 = arith.constant dense<0.000000e+00> : vector<2x32xf32>
    %261 = tpu.matmul %258, %260, %cst_83 {dimension_numbers = #tpu.dot_dimension_numbers<[1], [0], [0], [1], [0, 0, 1, 1], [], []>} : vector<2x32xbf16>, vector<32x32xbf16>, vector<2x32xf32> -> vector<2x32xf32>
    %262 = arith.addf %256, %261 : vector<2x32xf32>
    %263 = vector.extract_strided_slice %227 {offsets = [0, 6, 0], sizes = [2, 1, 32], strides = [1, 1, 1]} : vector<2x8x32xbf16> to vector<2x1x32xbf16>
    %264 = vector.shape_cast %263 : vector<2x1x32xbf16> to vector<2x32xbf16>
    %c6 = arith.constant 6 : index
    %c0_84 = arith.constant 0 : index
    %c0_85 = arith.constant 0 : index
    %265 = vector.load %arg9[%c6, %c0_84, %c0_85] : memref<8x32x32xbf16, #tpu.memory_space<vmem>>, vector<1x32x32xbf16>
    %266 = vector.shape_cast %265 : vector<1x32x32xbf16> to vector<32x32xbf16>
    %cst_86 = arith.constant dense<0.000000e+00> : vector<2x32xf32>
    %267 = tpu.matmul %264, %266, %cst_86 {dimension_numbers = #tpu.dot_dimension_numbers<[1], [0], [0], [1], [0, 0, 1, 1], [], []>} : vector<2x32xbf16>, vector<32x32xbf16>, vector<2x32xf32> -> vector<2x32xf32>
    %268 = arith.addf %262, %267 : vector<2x32xf32>
    %269 = vector.extract_strided_slice %227 {offsets = [0, 7, 0], sizes = [2, 1, 32], strides = [1, 1, 1]} : vector<2x8x32xbf16> to vector<2x1x32xbf16>
    %270 = vector.shape_cast %269 : vector<2x1x32xbf16> to vector<2x32xbf16>
    %c7 = arith.constant 7 : index
    %c0_87 = arith.constant 0 : index
    %c0_88 = arith.constant 0 : index
    %271 = vector.load %arg9[%c7, %c0_87, %c0_88] : memref<8x32x32xbf16, #tpu.memory_space<vmem>>, vector<1x32x32xbf16>
    %272 = vector.shape_cast %271 : vector<1x32x32xbf16> to vector<32x32xbf16>
    %cst_89 = arith.constant dense<0.000000e+00> : vector<2x32xf32>
    %273 = tpu.matmul %270, %272, %cst_89 {dimension_numbers = #tpu.dot_dimension_numbers<[1], [0], [0], [1], [0, 0, 1, 1], [], []>} : vector<2x32xbf16>, vector<32x32xbf16>, vector<2x32xf32> -> vector<2x32xf32>
    %274 = arith.addf %268, %273 : vector<2x32xf32>
    %c0_90 = arith.constant 0 : index
    %c0_91 = arith.constant 0 : index
    %275 = vector.load %arg10[%c0_90, %c0_91] : memref<1x32xf32, #tpu.memory_space<vmem>>, vector<1x32xf32>
    %276 = vector.broadcast %275 : vector<1x32xf32> to vector<2x32xf32>
    %277 = arith.addf %274, %276 : vector<2x32xf32>
    %278 = arith.truncf %277 : vector<2x32xf32> to vector<2x32xbf16>
    %c0_92 = arith.constant 0 : index
    %c0_93 = arith.constant 0 : index
    %279 = vector.load %arg11[%c0_92, %c0_93] : memref<32x32xbf16, #tpu.memory_space<vmem>>, vector<32x32xbf16>
    %cst_94 = arith.constant dense<0.000000e+00> : vector<2x32xf32>
    %280 = tpu.matmul %278, %279, %cst_94 {dimension_numbers = #tpu.dot_dimension_numbers<[1], [0], [0], [1], [0, 0, 1, 1], [], []>} : vector<2x32xbf16>, vector<32x32xbf16>, vector<2x32xf32> -> vector<2x32xf32>
    %281 = arith.mulf %277, %280 : vector<2x32xf32>
    %cst_95 = arith.constant 0.000000e+00 : f32
    %282 = vector.broadcast %cst_95 : f32 to vector<2x32xf32>
    %283 = arith.maximumf %281, %282 : vector<2x32xf32>
    %c0_96 = arith.constant 0 : index
    %c0_97 = arith.constant 0 : index
    %284 = vector.load %arg12[%c0_96, %c0_97] : memref<1x32xf32, #tpu.memory_space<vmem>>, vector<1x32xf32>
    %285 = vector.broadcast %284 : vector<1x32xf32> to vector<2x32xf32>
    %286 = arith.mulf %283, %285 : vector<2x32xf32>
    %cst_98 = arith.constant dense<0.000000e+00> : vector<2xf32>
    %287 = vector.multi_reduction <add>, %286, %cst_98 [1] : vector<2x32xf32> to vector<2xf32>
    %288 = vector.shape_cast %287 : vector<2xf32> to vector<2x1xf32>
    %c0_99 = arith.constant 0 : index
    %c0_100 = arith.constant 0 : index
    %289 = vector.load %arg13[%c0_99, %c0_100] : memref<1x1xf32, #tpu.memory_space<vmem>>, vector<1x1xf32>
    %290 = vector.broadcast %289 : vector<1x1xf32> to vector<2x1xf32>
    %291 = arith.addf %288, %290 : vector<2x1xf32>
    %cst_101 = arith.constant 0.000000e+00 : f32
    %292 = vector.broadcast %cst_101 : f32 to vector<2x1xf32>
    %293 = arith.subf %292, %291 : vector<2x1xf32>
    %294 = math.exp %293 : vector<2x1xf32>
    %cst_102 = arith.constant 1.000000e+00 : f32
    %295 = vector.broadcast %cst_102 : f32 to vector<2x1xf32>
    %296 = arith.addf %295, %294 : vector<2x1xf32>
    %cst_103 = arith.constant 1.000000e+00 : f32
    %297 = vector.broadcast %cst_103 : f32 to vector<2x1xf32>
    %298 = arith.divf %297, %296 : vector<2x1xf32>
    %c0_104 = arith.constant 0 : index
    %c0_105 = arith.constant 0 : index
    %299 = vector.load %arg14[%c0_104, %c0_105] : memref<2x1xf32, #tpu.memory_space<vmem>>, vector<2x1xf32>
    tpu.vector_store %arg14[%c0_104, %c0_105], %298 {strides = array<i32>} : memref<2x1xf32, #tpu.memory_space<vmem>>, vector<2x1xf32>,
    return
  }
  func.func @transform_0(%arg0: i32) -> (i32, i32, i32) {
    %c0_i32 = arith.constant 0 : i32
    %c0_i32_0 = arith.constant 0 : i32
    %c0_i32_1 = arith.constant 0 : i32
    return %arg0, %c0_i32, %c0_i32_0 : i32, i32, i32
  }
  func.func @transform_1(%arg0: i32) -> (i32, i32, i32) {
    %c0_i32 = arith.constant 0 : i32
    %c0_i32_0 = arith.constant 0 : i32
    %c0_i32_1 = arith.constant 0 : i32
    return %arg0, %c0_i32, %c0_i32_0 : i32, i32, i32
  }
  func.func @transform_2(%arg0: i32) -> (i32, i32) {
    %c0_i32 = arith.constant 0 : i32
    %c0_i32_0 = arith.constant 0 : i32
    %c0_i32_1 = arith.constant 0 : i32
    return %c0_i32, %c0_i32_0 : i32, i32
  }
  func.func @transform_3(%arg0: i32) -> (i32, i32) {
    %c0_i32 = arith.constant 0 : i32
    %c0_i32_0 = arith.constant 0 : i32
    %c0_i32_1 = arith.constant 0 : i32
    return %c0_i32, %c0_i32_0 : i32, i32
  }
  func.func @transform_4(%arg0: i32) -> (i32, i32) {
    %c0_i32 = arith.constant 0 : i32
    %c0_i32_0 = arith.constant 0 : i32
    %c0_i32_1 = arith.constant 0 : i32
    return %c0_i32, %c0_i32_0 : i32, i32
  }
  func.func @transform_5(%arg0: i32) -> (i32, i32) {
    %c0_i32 = arith.constant 0 : i32
    %c0_i32_0 = arith.constant 0 : i32
    %c0_i32_1 = arith.constant 0 : i32
    return %c0_i32, %c0_i32_0 : i32, i32
  }
  func.func @transform_6(%arg0: i32) -> (i32, i32) {
    %c0_i32 = arith.constant 0 : i32
    %c0_i32_0 = arith.constant 0 : i32
    %c0_i32_1 = arith.constant 0 : i32
    return %c0_i32, %c0_i32_0 : i32, i32
  }
  func.func @transform_7(%arg0: i32) -> (i32, i32) {
    %c0_i32 = arith.constant 0 : i32
    %c0_i32_0 = arith.constant 0 : i32
    %c0_i32_1 = arith.constant 0 : i32
    return %c0_i32, %c0_i32_0 : i32, i32
  }
  func.func @transform_8(%arg0: i32) -> (i32, i32, i32) {
    %c0_i32 = arith.constant 0 : i32
    %c0_i32_0 = arith.constant 0 : i32
    %c0_i32_1 = arith.constant 0 : i32
    %c0_i32_2 = arith.constant 0 : i32
    return %c0_i32, %c0_i32_0, %c0_i32_1 : i32, i32, i32
  }
  func.func @transform_9(%arg0: i32) -> (i32, i32) {
    %c0_i32 = arith.constant 0 : i32
    %c0_i32_0 = arith.constant 0 : i32
    %c0_i32_1 = arith.constant 0 : i32
    return %c0_i32, %c0_i32_0 : i32, i32
  }
  func.func @transform_10(%arg0: i32) -> (i32, i32) {
    %c0_i32 = arith.constant 0 : i32
    %c0_i32_0 = arith.constant 0 : i32
    %c0_i32_1 = arith.constant 0 : i32
    return %c0_i32, %c0_i32_0 : i32, i32
  }
  func.func @transform_11(%arg0: i32) -> (i32, i32) {
    %c0_i32 = arith.constant 0 : i32
    %c0_i32_0 = arith.constant 0 : i32
    %c0_i32_1 = arith.constant 0 : i32
    return %c0_i32, %c0_i32_0 : i32, i32
  }
  func.func @transform_12(%arg0: i32) -> (i32, i32) {
    %c0_i32 = arith.constant 0 : i32
    %c0_i32_0 = arith.constant 0 : i32
    %c0_i32_1 = arith.constant 0 : i32
    return %c0_i32, %c0_i32_0 : i32, i32
  }
  func.func @transform_13(%arg0: i32) -> (i32, i32) {
    %c0_i32 = arith.constant 0 : i32
    %c0_i32_0 = arith.constant 0 : i32
    return %arg0, %c0_i32 : i32, i32
  }
}

</mosaic_0001>

<bundles_post_ra>
// kernel: gcn_encoder_forward.1
= control target key start
LH: loop header
LB: loop body
LE: loop exit
PB: predicated region body
PF: predicated region fallthrough
CT: control target
= control target key end

     0   :  { %s2035_s0 = inlined_call_operand.vmem [shape: bf16[2,8,8], index: 0, kind: input, shape index: {}]   ;;  %s2036_s1 = inlined_call_operand.vmem [shape: bf16[2,8,16], index: 1, kind: input, shape index: {}]   ;;  %s2037_s2 = inlined_call_operand.vmem [shape: bf16[16,32], index: 2, kind: input, shape index: {}]   ;;  %s2038_s3 = inlined_call_operand.vmem [shape: f32[1,32], index: 3, kind: input, shape index: {}]   ;;  %s2039_s4 = inlined_call_operand.vmem [shape: bf16[32,32], index: 4, kind: input, shape index: {}]   ;;  %s2040_s5 = inlined_call_operand.vmem [shape: f32[1,32], index: 5, kind: input, shape index: {}]   ;;  %s2041_s6 = inlined_call_operand.vmem [shape: bf16[32,32], index: 6, kind: input, shape index: {}]   ;;  %s2042_s7 = inlined_call_operand.vmem [shape: f32[1,32], index: 7, kind: input, shape index: {}]   ;;  %s2043_s8 = inlined_call_operand.hbm [shape: bf16[8,32,32], index: 8, kind: input, shape index: {}]   ;;  %s2044_s9 = inlined_call_operand.vmem [shape: f32[1,32], index: 9, kind: input, shape index: {}]   ;;  %s2045_s10 = inlined_call_operand.vmem [shape: bf16[32,32], index: 10, kind: input, shape index: {}]   ;;  %s2046_s11 = inlined_call_operand.vmem [shape: f32[1,32], index: 11, kind: input, shape index: {}]   ;;  %s2047_s12 = inlined_call_operand.<no memory space> [shape: f32[1,1], index: 12, kind: input, shape index: {}]   ;;  %s2048_s13 = inlined_call_operand.vmem [shape: f32[2,1], index: 13, kind: output, shape index: {}]  }
   0x1   :  { %v18_v0 = vstv %s2047_s12 }
   0x2   :  { %19 = vst [vmem:[#allocation2] sm:$0x1] %v18_v0 }
   0x3   :  { %20 = vsyncpa [#allocation4], 0  ;;  %s1689_s27 = smov [#allocation3]   ;;  %s1665_s14 = scalar_lea.hbm %s2043_s8, 2048 }
   0x4   :  { %s42_s28 = sshll.u32 %s1689_s27, 4  ;;  %p1666_p0 = scmp.ne.s32.totalorder %s2043_s8, %s1665_s14  ;;  %s43_s28 = int_to_ptr.vmem [resolvable:$true] %s42_s28 }
   0x5   :  { %p1669_p1 = scmp.lt.u32.totalorder %s1665_s14, %s2043_s8 }
   0x7   :  { %p1671_p2 = pnand %p1669_p1, %p1666_p0 }
   0x9   :  { %1674 = shalt.err (!%p1671_p2)
}
   0xa   :  { %s1675_s12 = scalar_lea.vmem %s43_s28, 2048  ;;  %p1680_p4 = scmp.lt.s32.totalorder %s43_s28, %s43_s28 }
   0xb   :  { %p1676_p3 = scmp.ne.s32.totalorder %s43_s28, %s1675_s12  ;;  %p1681_p5 = scmp.lt.s32.totalorder %s1675_s12, %s1675_s12 }
   0xd   :  { %p1682_p6 = por %p1681_p5, %p1680_p4 }
   0xf   :  { %p1683_p7 = pnand %p1682_p6, %p1676_p3 }
  0x11   :  { %1686 = shalt.err (!%p1683_p7)
}
  0x12   :  { %s1690_s19 = smov 64   ;;  %s1691_s20 = smov 4  }
  0x13   :  { %48 = dma.hbm_to_vmem [thread:$0]  %s2043_s8, 2048, %s43_s28, [#allocation4], %s1690_s19, %s1690_s19, %s1691_s20  }
  0x14   :  { %1687 = dma.done.wait [#allocation4], 2048  }
  0x15   :  { %1688 = vsyncadd [#allocation4], 4294965248  ;;  %v1692_v1 = vmov 0.0   ;;  %vm1693_vm0 = vmmov 0   ;;  %vm77_vm1 = vcmask 1043456   ;;  %vm73_vm2 = vcmask 64512  }
  0x16   :  { %1471 = vmatprep.subr.bf16.mxu0 %v1692_v1  ;;  %1477 = vmatprep.subr.bf16.mxu1 %v1692_v1  ;;  %v63_v2 = vld [vmem:[%s2036_s1] sm:$0xf]  ;;  %v64_v3 = vld [vmem:[%s2036_s1 + $0x4] sm:$0xf]  ;;  %vm180_vm3 = vcmask 130048   ;;  %v68_v22 = vlaneseq  ;;  %vm235_vm4 = vcmask 261120  }
  0x17   :  { %1473 = vmatprep.mubr.msk.bf16.mxu0 %vm1693_vm0, %v1692_v1  ;;  %1479 = vmatprep.mubr.msk.bf16.mxu1 %vm1693_vm0, %v1692_v1  ;;  %v1794_v4 = vld [vmem:[%s2035_s0] sm:$0xf]  ;;  %v79_v5 = vsel %vm77_vm1, %v63_v2, 0  ;;  %v125_v6 = vsel %vm77_vm1, %v64_v3, 0  ;;  %v1801_v7 = vld [vmem:[%s2035_s0 + $0x4] sm:$0xf]  ;;  %v71_v9 = vunpack.c.l.bf16 %v63_v2  ;;  %v72_v10 = vunpack.c.l.bf16 %v64_v3 }
  0x18   :  { %1472 = vmatpush3.bf16.msra.mxu0 %v79_v5  ;;  %1478 = vmatpush3.bf16.msra.mxu1 %v125_v6  ;;  %v1606_v8 = vld [vmem:[%s2037_s2] sm:$0xff]   ;;  %v1822_v24 = vand.u32 127, %v68_v22  ;;  %vm762_vm6 = vcmask 1041409   ;;  %vm1346_vm7 = vcmask 254976   ;;  %vm1364_vm8 = vcmask 1024  }
  0x19   :  { %1483 = vmatprep.subr.bf16.mxu0 %v1692_v1  ;;  %1489 = vmatprep.subr.bf16.mxu1 %v1692_v1  ;;  %v1376_v23 = vld [vmem:[%s2038_s3] ss:$0 sm:$0xff] }
  0x1a   :  { %vm70_vm5 = vcmp.lt.s32.totalorder %v1822_v24, 16 }
  0x1b   :  { %1474 = vmatmul.mubr.msk.bf16.vlgmr.msra.gmra.mrb[0].mxu0 %vm73_vm2, %v1794_v4  ;;  %1480 = vmatmul.mubr.msk.bf16.vlgmr.msra.gmra.mrb[0].mxu1 %vm73_vm2, %v1801_v7 }
  0x1c   :  { %1485 = vmatprep.mubr.msk.bf16.mxu0 %vm1693_vm0, %v1692_v1  ;;  %1491 = vmatprep.mubr.msk.bf16.mxu1 %vm1693_vm0, %v1692_v1 }
  0x1d   :  { %1484 = vmatpush3.bf16.msra.mxu0 %v1606_v8 }
  0x1e   :  { %1495 = vmatprep.subr.bf16.mxu0 %v1692_v1 }
  0xee   :  { %v115_v11 = vpop.f32.mrb[0].mxu0  ;;  %v161_v12 = vpop.f32.mrb[0].mxu1 }
  0xef   :  { %v116_v13 = vadd.f32 %v115_v11, %v71_v9  ;;  %v162_v14 = vadd.f32 %v161_v12, %v72_v10  ;;  %v1475_v15 = vpop.f32.mrb[1].mxu0  ;;  %v1481_v16 = vpop.f32.mrb[1].mxu1 }
  0xf0   :  { %v118_v17 = vpop.f32.mrb[2].mxu0  ;;  %v164_v18 = vpop.f32.mrb[2].mxu1 }
  0xf1   :  { %v1421_v19 = vpack.c.bf16 %v162_v14, %v116_v13  ;;  %v1476_v20 = vpop.f32.mrb[3].mxu0  ;;  %v1482_v21 = vpop.f32.mrb[3].mxu1 }
  0xf3   :  { %1486 = vmatmul.mubr.msk.bf16.vlgmr.msra.gmra.mrb[4].mxu0 %vm180_vm3, %v1421_v19 }
  0xf4   :  { %1497 = vmatprep.mubr.msk.bf16.mxu0 %vm1693_vm0, %v1692_v1 }
 0x1c6   :  { %v218_v25 = vpop.f32.mrb[4].mxu0 }
 0x1c7   :  { %v231_v26 = vadd.f32 %v1376_v23, %v218_v25  ;;  %v1487_v27 = vpop.f32.mrb[5].mxu0 }
 0x1c8   :  { %v221_v28 = vpop.f32.mrb[6].mxu0 }
 0x1c9   :  { %v232_v29 = vadd.f32 %v1376_v23, %v221_v28  ;;  %v1488_v30 = vpop.f32.mrb[7].mxu0  ;;  %v233_v31 = vmul.f32 %v231_v26, %v231_v26 }
 0x1cb   :  { %v236_v32 = vsel %vm235_vm4, %v233_v31, 0.0  ;;  %v244_v33 = vsel %vm70_vm5, %v233_v31, 0.0  ;;  %v234_v34 = vmul.f32 %v232_v29, %v232_v29 }
 0x1cc   :  { %237 = vadd.xlane.f32.xlu0 %v236_v32  ;;  %v246_v35 = vsel %vm235_vm4, %v244_v33, 0.0 }
 0x1cd   :  { %247 = vadd.xlane.f32.xlu1 %v246_v35  ;;  %v245_v36 = vsel %vm70_vm5, %v234_v34, 0.0  ;;  %v239_v37 = vsel %vm235_vm4, %v234_v34, 0.0 }
 0x1ce   :  { %v249_v38 = vsel %vm235_vm4, %v245_v36, 0.0 }
 0x1d0   :  { %240 = vadd.xlane.f32.xlu0 %v239_v37 }
 0x1d1   :  { %250 = vadd.xlane.f32.xlu1 %v249_v38 }
 0x259   :  { %v238_v39 = vpop.xlane.xlu0 %237 }
 0x25a   :  { %v248_v40 = vpop.xlane.xlu1 %247 }
 0x25b   :  { %v252_v41 = vmax.f32 %v248_v40, 1e-24  ;;  %v256_v42 = vsub.f32 %v238_v39, %v248_v40 }
 0x25d   :  { %v258_v43 = vmax.f32 %v256_v42, 1e-24  ;;  %v241_v44 = vpop.xlane.xlu0 %240  ;;  %1629 = vrsqrt.f32 %v252_v41  ;;  %v1607_v41 = vld [vmem:[%s2039_s4] sm:$0xff]   ;;  %v1608_v42 = vld [vmem:[%s2039_s4 + $0x8] sm:$0xff]  }
 0x25e   :  { %v251_v45 = vpop.xlane.xlu1 %250 }
 0x25f   :  { %1631 = vrsqrt.f32 %v258_v43  ;;  %v253_v46 = vmax.f32 %v251_v45, 1e-24  ;;  %v257_v47 = vsub.f32 %v241_v44, %v251_v45 }
 0x261   :  { %v259_v48 = vmax.f32 %v257_v47, 1e-24  ;;  %1633 = vrsqrt.f32 %v253_v46 }
 0x263   :  { %1635 = vrsqrt.f32 %v259_v48 }
 0x267   :  { %v1630_v49 = vpop.eup %1629 }
 0x269   :  { %v1632_v50 = vpop.eup %1631 }
 0x26a   :  { %v262_v51 = vsel %vm70_vm5, %v1630_v49, %v1632_v50 }
 0x26b   :  { %v264_v52 = vmul.f32 %v262_v51, %v231_v26  ;;  %v1634_v53 = vpop.eup %1633 }
 0x26d   :  { %v1636_v54 = vpop.eup %1635  ;;  %v266_v55 = vmax.f32 %v264_v52, 0.0 }
 0x26e   :  { %v263_v56 = vsel %vm70_vm5, %v1634_v53, %v1636_v54 }
 0x26f   :  { %v265_v57 = vmul.f32 %v263_v56, %v232_v29  ;;  %v273_v59 = vsel %vm70_vm5, %v266_v55, 0.0  ;;  %v268_v60 = vsel %vm235_vm4, %v266_v55, 0.0  ;;  %v1383_v56 = vld [vmem:[%s2040_s5] ss:$0 sm:$0xff] }
 0x270   :  { %v275_v0 = vsel %vm235_vm4, %v273_v59, 0.0 }
 0x271   :  { %v267_v58 = vmax.f32 %v265_v57, 0.0 }
 0x273   :  { %v269_v61 = vsel %vm235_vm4, %v267_v58, 0.0  ;;  %v274_v62 = vsel %vm70_vm5, %v267_v58, 0.0 }
 0x274   :  { %v270_v63 = vadd.f32 %v269_v61, %v268_v60  ;;  %v276_v2 = vsel %vm235_vm4, %v274_v62, 0.0 }
 0x275   :  { %v277_v3 = vadd.f32 %v276_v2, %v275_v0 }
 0x276   :  { %271 = vadd.xlane.f32.xlu0 %v270_v63 }
 0x277   :  { %278 = vadd.xlane.f32.xlu1 %v277_v3 }
 0x303   :  { %v272_v5 = vpop.xlane.xlu0 %271 }
 0x304   :  { %v279_v6 = vpop.xlane.xlu1 %278 }
 0x305   :  { %v281_v8 = vsub.f32 %v272_v5, %v279_v6  ;;  %v280_v9 = vmul.f32 0.03125, %v279_v6 }
 0x307   :  { %v282_v10 = vmul.f32 0.03125, %v281_v8 }
 0x309   :  { %v283_v11 = vsel %vm70_vm5, %v280_v9, %v282_v10 }
 0x30a   :  { %v284_v12 = vsub.f32 %v266_v55, %v283_v11  ;;  %v285_v13 = vsub.f32 %v267_v58, %v283_v11 }
 0x30c   :  { %v286_v14 = vmul.f32 %v284_v12, %v284_v12  ;;  %v287_v15 = vmul.f32 %v285_v13, %v285_v13 }
 0x30e   :  { %v288_v16 = vsel %vm235_vm4, %v286_v14, 0.0  ;;  %v289_v17 = vsel %vm235_vm4, %v287_v15, 0.0  ;;  %v293_v18 = vsel %vm70_vm5, %v286_v14, 0.0  ;;  %v294_v19 = vsel %vm70_vm5, %v287_v15, 0.0 }
 0x30f   :  { %v290_v20 = vadd.f32 %v289_v17, %v288_v16  ;;  %v295_v21 = vsel %vm235_vm4, %v293_v18, 0.0  ;;  %v296_v22 = vsel %vm235_vm4, %v294_v19, 0.0 }
 0x310   :  { %v297_v23 = vadd.f32 %v296_v22, %v295_v21 }
 0x311   :  { %291 = vadd.xlane.f32.xlu0 %v290_v20 }
 0x312   :  { %298 = vadd.xlane.f32.xlu1 %v297_v23 }
 0x39e   :  { %v292_v25 = vpop.xlane.xlu0 %291 }
 0x39f   :  { %v299_v26 = vpop.xlane.xlu1 %298 }
 0x3a0   :  { %v300_v27 = vmul.f32 0.03125, %v299_v26  ;;  %v303_v28 = vsub.f32 %v292_v25, %v299_v26 }
 0x3a2   :  { %v301_v29 = vadd.f32 1e-05, %v300_v27  ;;  %v304_v30 = vmul.f32 0.03125, %v303_v28 }
 0x3a4   :  { %v305_v31 = vadd.f32 1e-05, %v304_v30  ;;  %1637 = vrsqrt.f32 %v301_v29 }
 0x3a6   :  { %1639 = vrsqrt.f32 %v305_v31 }
 0x3ae   :  { %v1638_v32 = vpop.eup %1637 }
 0x3b0   :  { %v1640_v33 = vpop.eup %1639 }
 0x3b1   :  { %v307_v34 = vsel %vm70_vm5, %v1638_v32, %v1640_v33 }
 0x3b2   :  { %v308_v35 = vmul.f32 %v307_v34, %v284_v12  ;;  %v309_v36 = vmul.f32 %v307_v34, %v285_v13 }
 0x3b4   :  { %v310_v37 = vpack.c.bf16 %v308_v35, %v308_v35  ;;  %v311_v38 = vpack.c.bf16 %v309_v36, %v309_v36 }
 0x3b6   :  { %v320_v39 = vsel %vm77_vm1, %v310_v37, 0  ;;  %v363_v40 = vsel %vm77_vm1, %v311_v38, 0  ;;  %v317_v43 = vunpack.c.l.bf16 %v310_v37  ;;  %v318_v44 = vunpack.c.l.bf16 %v311_v38 }
 0x3b7   :  { %1490 = vmatpush3.bf16.msra.mxu1 %v320_v39  ;;  %1496 = vmatpush3.bf16.msra.mxu0 %v363_v40 }
 0x3b8   :  { %1501 = vmatprep.subr.bf16.mxu1 %v1692_v1  ;;  %1509 = vmatprep.subr.bf16.mxu0 %v1692_v1 }
 0x3ba   :  { %1492 = vmatmul.mubr.msk.bf16.vlgmr.msra.gmra.mrb[4].mxu1 %vm73_vm2, %v1794_v4  ;;  %1498 = vmatmul.mubr.msk.bf16.vlgmr.msra.gmra.mrb[8].mxu0 %vm73_vm2, %v1801_v7 }
 0x3bb   :  { %1502 = vmatpush3.bf16.msra.mxu1 %v1607_v41  ;;  %1505 = vmatprep.mubr.msk.bf16.mxu1 %vm1693_vm0, %v1692_v1 }
 0x3bc   :  { %1503 = vmatprep.subr.bf16.mxu1 %v1692_v1  ;;  %1511 = vmatprep.mubr.msk.bf16.mxu0 %vm1693_vm0, %v1692_v1 }
 0x3bf   :  { %1504 = vmatpush3.bf16.msra.mxu1 %v1608_v42 }
 0x3c0   :  { %1515 = vmatprep.subr.bf16.mxu1 %v1692_v1 }
 0x48d   :  { %v356_v45 = vpop.f32.mrb[4].mxu1  ;;  %v399_v46 = vpop.f32.mrb[8].mxu0 }
 0x48e   :  { %v357_v47 = vadd.f32 %v356_v45, %v317_v43  ;;  %v400_v48 = vadd.f32 %v399_v46, %v318_v44  ;;  %v1493_v49 = vpop.f32.mrb[5].mxu1  ;;  %v1499_v50 = vpop.f32.mrb[9].mxu0 }
 0x48f   :  { %v359_v51 = vpop.f32.mrb[6].mxu1  ;;  %v402_v52 = vpop.f32.mrb[10].mxu0 }
 0x490   :  { %v1422_v53 = vpack.c.bf16 %v400_v48, %v357_v47  ;;  %v1494_v54 = vpop.f32.mrb[7].mxu1  ;;  %v1500_v55 = vpop.f32.mrb[11].mxu0 }
 0x492   :  { %1506 = vmatmul.mubr.msk.bf16.vlgmr.msra.gmra.mrb[8].mxu1 %vm235_vm4, %v1422_v53 }
 0x493   :  { %1517 = vmatprep.mubr.msk.bf16.mxu1 %vm1693_vm0, %v1692_v1 }
 0x565   :  { %v461_v57 = vpop.f32.mrb[8].mxu1 }
 0x566   :  { %v474_v58 = vadd.f32 %v1383_v56, %v461_v57  ;;  %v1507_v59 = vpop.f32.mrb[9].mxu1 }
 0x567   :  { %v464_v60 = vpop.f32.mrb[10].mxu1 }
 0x568   :  { %v475_v61 = vadd.f32 %v1383_v56, %v464_v60  ;;  %v1508_v62 = vpop.f32.mrb[11].mxu1  ;;  %v476_v63 = vmul.f32 %v474_v58, %v474_v58 }
 0x56a   :  { %v478_v0 = vsel %vm235_vm4, %v476_v63, 0.0  ;;  %v477_v2 = vmul.f32 %v475_v61, %v475_v61  ;;  %v484_v3 = vsel %vm70_vm5, %v476_v63, 0.0 }
 0x56b   :  { %479 = vadd.xlane.f32.xlu0 %v478_v0  ;;  %v486_v8 = vsel %vm235_vm4, %v484_v3, 0.0 }
 0x56c   :  { %v481_v5 = vsel %vm235_vm4, %v477_v2, 0.0  ;;  %v485_v6 = vsel %vm70_vm5, %v477_v2, 0.0 }
 0x56d   :  { %482 = vadd.xlane.f32.xlu1 %v481_v5  ;;  %v489_v9 = vsel %vm235_vm4, %v485_v6, 0.0 }
 0x56f   :  { %487 = vadd.xlane.f32.xlu0 %v486_v8 }
 0x571   :  { %490 = vadd.xlane.f32.xlu1 %v489_v9 }
 0x5f8   :  { %v480_v10 = vpop.xlane.xlu0 %479 }
 0x5fa   :  { %v483_v11 = vpop.xlane.xlu1 %482 }
 0x5fc   :  { %v488_v12 = vpop.xlane.xlu0 %487 }
 0x5fd   :  { %v492_v13 = vmax.f32 %v488_v12, 1e-24  ;;  %v496_v14 = vsub.f32 %v480_v10, %v488_v12  ;;  %v1609_v12 = vld [vmem:[%s2041_s6] sm:$0xff]  }
 0x5fe   :  { %v491_v15 = vpop.xlane.xlu1 %490 }
 0x5ff   :  { %v498_v16 = vmax.f32 %v496_v14, 1e-24  ;;  %v493_v17 = vmax.f32 %v491_v15, 1e-24  ;;  %v497_v18 = vsub.f32 %v483_v11, %v491_v15  ;;  %1641 = vrsqrt.f32 %v492_v13  ;;  %v1610_v13 = vld [vmem:[%s2041_s6 + $0x8] sm:$0xff]  }
 0x601   :  { %1643 = vrsqrt.f32 %v498_v16  ;;  %v499_v19 = vmax.f32 %v497_v18, 1e-24 }
 0x602   :  { %1645 = vrsqrt.f32 %v493_v17 }
 0x603   :  { %1647 = vrsqrt.f32 %v499_v19 }
 0x609   :  { %v1642_v20 = vpop.eup %1641 }
 0x60b   :  { %v1644_v21 = vpop.eup %1643 }
 0x60c   :  { %v1646_v22 = vpop.eup %1645  ;;  %v502_v23 = vsel %vm70_vm5, %v1642_v20, %v1644_v21 }
 0x60d   :  { %v1648_v25 = vpop.eup %1647  ;;  %v504_v26 = vmul.f32 %v502_v23, %v474_v58 }
 0x60e   :  { %v503_v27 = vsel %vm70_vm5, %v1646_v22, %v1648_v25 }
 0x60f   :  { %v505_v28 = vmul.f32 %v503_v27, %v475_v61  ;;  %v506_v29 = vmax.f32 %v504_v26, 0.0  ;;  %v1390_v26 = vld [vmem:[%s2042_s7] ss:$0 sm:$0xff] }
 0x611   :  { %v507_v30 = vmax.f32 %v505_v28, 0.0  ;;  %v513_v31 = vsel %vm70_vm5, %v506_v29, 0.0  ;;  %v508_v32 = vsel %vm235_vm4, %v506_v29, 0.0 }
 0x612   :  { %v515_v36 = vsel %vm235_vm4, %v513_v31, 0.0 }
 0x613   :  { %v509_v33 = vsel %vm235_vm4, %v507_v30, 0.0  ;;  %v514_v34 = vsel %vm70_vm5, %v507_v30, 0.0 }
 0x614   :  { %v510_v35 = vadd.f32 %v509_v33, %v508_v32  ;;  %v516_v37 = vsel %vm235_vm4, %v514_v34, 0.0 }
 0x615   :  { %v517_v38 = vadd.f32 %v516_v37, %v515_v36 }
 0x616   :  { %511 = vadd.xlane.f32.xlu0 %v510_v35 }
 0x617   :  { %518 = vadd.xlane.f32.xlu1 %v517_v38 }
 0x6a3   :  { %v512_v39 = vpop.xlane.xlu0 %511 }
 0x6a4   :  { %v519_v40 = vpop.xlane.xlu1 %518 }
 0x6a5   :  { %v521_v41 = vsub.f32 %v512_v39, %v519_v40  ;;  %v520_v42 = vmul.f32 0.03125, %v519_v40 }
 0x6a7   :  { %v522_v43 = vmul.f32 0.03125, %v521_v41  ;;  %v1611_v41 = vld [vmem:[#allocation3 + $0x10] sm:$0xff]  }
 0x6a9   :  { %v523_v44 = vsel %vm70_vm5, %v520_v42, %v522_v43  ;;  %v1612_v42 = vld [vmem:[#allocation3] sm:$0xff]   ;;  %v1613_v43 = vld [vmem:[#allocation3 + $0x18] sm:$0xff]  }
 0x6aa   :  { %v524_v45 = vsub.f32 %v506_v29, %v523_v44  ;;  %v525_v46 = vsub.f32 %v507_v30, %v523_v44  ;;  %v1614_v44 = vld [vmem:[#allocation3 + $0x8] sm:$0xff]  }
 0x6ac   :  { %v526_v47 = vmul.f32 %v524_v45, %v524_v45  ;;  %v527_v48 = vmul.f32 %v525_v46, %v525_v46 }
 0x6ae   :  { %v528_v49 = vsel %vm235_vm4, %v526_v47, 0.0  ;;  %v529_v50 = vsel %vm235_vm4, %v527_v48, 0.0  ;;  %v533_v51 = vsel %vm70_vm5, %v526_v47, 0.0  ;;  %v534_v52 = vsel %vm70_vm5, %v527_v48, 0.0 }
 0x6af   :  { %v530_v53 = vadd.f32 %v529_v50, %v528_v49  ;;  %v535_v54 = vsel %vm235_vm4, %v533_v51, 0.0  ;;  %v536_v55 = vsel %vm235_vm4, %v534_v52, 0.0 }
 0x6b0   :  { %v537_v56 = vadd.f32 %v536_v55, %v535_v54 }
 0x6b1   :  { %531 = vadd.xlane.f32.xlu0 %v530_v53 }
 0x6b2   :  { %538 = vadd.xlane.f32.xlu1 %v537_v56 }
 0x73e   :  { %v532_v57 = vpop.xlane.xlu0 %531 }
 0x73f   :  { %v539_v58 = vpop.xlane.xlu1 %538 }
 0x740   :  { %v540_v59 = vmul.f32 0.03125, %v539_v58  ;;  %v543_v60 = vsub.f32 %v532_v57, %v539_v58 }
 0x742   :  { %v541_v61 = vadd.f32 1e-05, %v540_v59  ;;  %v544_v62 = vmul.f32 0.03125, %v543_v60 }
 0x744   :  { %v545_v63 = vadd.f32 1e-05, %v544_v62  ;;  %1649 = vrsqrt.f32 %v541_v61 }
 0x746   :  { %1651 = vrsqrt.f32 %v545_v63 }
 0x74e   :  { %v1650_v0 = vpop.eup %1649 }
 0x750   :  { %v1652_v2 = vpop.eup %1651 }
 0x751   :  { %v547_v3 = vsel %vm70_vm5, %v1650_v0, %v1652_v2 }
 0x752   :  { %v548_v5 = vmul.f32 %v547_v3, %v524_v45  ;;  %v549_v6 = vmul.f32 %v547_v3, %v525_v46 }
 0x754   :  { %v550_v8 = vpack.c.bf16 %v548_v5, %v548_v5  ;;  %v551_v9 = vpack.c.bf16 %v549_v6, %v549_v6 }
 0x756   :  { %v560_v10 = vsel %vm77_vm1, %v550_v8, 0  ;;  %v603_v11 = vsel %vm77_vm1, %v551_v9, 0  ;;  %v558_v14 = vunpack.c.l.bf16 %v551_v9 }
 0x757   :  { %1510 = vmatpush3.bf16.msra.mxu0 %v560_v10  ;;  %1516 = vmatpush3.bf16.msra.mxu1 %v603_v11  ;;  %v1616_v11 = vld [vmem:[#allocation3 + $0x30] sm:$0xff]  }
 0x758   :  { %1521 = vmatprep.subr.bf16.mxu0 %v1692_v1  ;;  %1529 = vmatprep.subr.bf16.mxu1 %v1692_v1 }
 0x75a   :  { %1512 = vmatmul.mubr.msk.bf16.vlgmr.msra.gmra.mrb[12].mxu0 %vm73_vm2, %v1794_v4  ;;  %1518 = vmatmul.mubr.msk.bf16.vlgmr.msra.gmra.mrb[12].mxu1 %vm73_vm2, %v1801_v7  ;;  %v557_v4 = vunpack.c.l.bf16 %v550_v8  ;;  %v1615_v8 = vld [vmem:[#allocation3 + $0x20] sm:$0xff]  }
 0x75b   :  { %1522 = vmatpush3.bf16.msra.mxu0 %v1609_v12  ;;  %1525 = vmatprep.mubr.msk.bf16.mxu0 %vm1693_vm0, %v1692_v1 }
 0x75c   :  { %1523 = vmatprep.subr.bf16.mxu0 %v1692_v1  ;;  %1533 = vmatprep.mubr.msk.bf16.mxu1 %vm1693_vm0, %v1692_v1 }
 0x75d   :  { %1530 = vmatpush3.bf16.msra.mxu1 %v1611_v41 }
 0x75e   :  { %1531 = vmatprep.subr.bf16.mxu1 %v1692_v1 }
 0x75f   :  { %1524 = vmatpush3.bf16.msra.mxu0 %v1610_v13 }
 0x760   :  { %1537 = vmatprep.subr.bf16.mxu0 %v1692_v1 }
 0x761   :  { %1532 = vmatpush3.bf16.msra.mxu1 %v1613_v43 }
 0x762   :  { %1545 = vmatprep.subr.bf16.mxu1 %v1692_v1 }
 0x82d   :  { %v596_v15 = vpop.f32.mrb[12].mxu0  ;;  %v639_v7 = vpop.f32.mrb[12].mxu1 }
 0x82e   :  { %v597_v16 = vadd.f32 %v596_v15, %v557_v4  ;;  %v640_v17 = vadd.f32 %v639_v7, %v558_v14  ;;  %v1513_v18 = vpop.f32.mrb[13].mxu0  ;;  %v1519_v19 = vpop.f32.mrb[13].mxu1  ;;  %v1617_v4 = vld [vmem:[#allocation3 + $0x28] sm:$0xff]   ;;  %v1618_v7 = vld [vmem:[#allocation3 + $0x38] sm:$0xff]  }
 0x82f   :  { %v599_v20 = vpop.f32.mrb[14].mxu0  ;;  %v642_v21 = vpop.f32.mrb[14].mxu1  ;;  %v1619_v18 = vld [vmem:[#allocation3 + $0x40] sm:$0xff]  }
 0x830   :  { %v1423_v22 = vpack.c.bf16 %v640_v17, %v597_v16  ;;  %v1514_v23 = vpop.f32.mrb[15].mxu0  ;;  %v1520_v25 = vpop.f32.mrb[15].mxu1  ;;  %v1620_v21 = vld [vmem:[#allocation3 + $0x50] sm:$0xff]  }
 0x831   :  { %v1621_v25 = vld [vmem:[#allocation3 + $0x48] sm:$0xff]  }
 0x832   :  { %1526 = vmatmul.mubr.msk.bf16.vlgmr.msra.gmra.mrb[16].mxu0 %vm235_vm4, %v1423_v22 }
 0x833   :  { %1541 = vmatprep.mubr.msk.bf16.mxu0 %vm1693_vm0, %v1692_v1  ;;  %1538 = vmatpush3.bf16.msra.mxu0 %v1612_v42 }
 0x834   :  { %1539 = vmatprep.subr.bf16.mxu0 %v1692_v1 }
 0x837   :  { %1540 = vmatpush3.bf16.msra.mxu0 %v1614_v44 }
 0x838   :  { %1553 = vmatprep.subr.bf16.mxu0 %v1692_v1 }
 0x905   :  { %v701_v27 = vpop.f32.mrb[16].mxu0 }
 0x906   :  { %v714_v28 = vadd.f32 %v1390_v26, %v701_v27  ;;  %v1527_v29 = vpop.f32.mrb[17].mxu0 }
 0x907   :  { %v704_v30 = vpop.f32.mrb[18].mxu0 }
 0x908   :  { %v715_v31 = vadd.f32 %v1390_v26, %v704_v30  ;;  %v1528_v32 = vpop.f32.mrb[19].mxu0  ;;  %v716_v33 = vmul.f32 %v714_v28, %v714_v28 }
 0x90a   :  { %v718_v34 = vsel %vm235_vm4, %v716_v33, 0.0  ;;  %v724_v35 = vsel %vm70_vm5, %v716_v33, 0.0  ;;  %v717_v36 = vmul.f32 %v715_v31, %v715_v31 }
 0x90b   :  { %719 = vadd.xlane.f32.xlu0 %v718_v34  ;;  %v726_v37 = vsel %vm235_vm4, %v724_v35, 0.0  ;;  %v1624_v34 = vld [vmem:[#allocation3 + $0x70] sm:$0xff]  }
 0x90c   :  { %727 = vadd.xlane.f32.xlu1 %v726_v37  ;;  %v725_v38 = vsel %vm70_vm5, %v717_v36, 0.0  ;;  %v721_v39 = vsel %vm235_vm4, %v717_v36, 0.0  ;;  %v1625_v37 = vld [vmem:[#allocation3 + $0x68] sm:$0xff]  }
 0x90d   :  { %v729_v40 = vsel %vm235_vm4, %v725_v38, 0.0 }
 0x90f   :  { %722 = vadd.xlane.f32.xlu0 %v721_v39 }
 0x910   :  { %730 = vadd.xlane.f32.xlu1 %v729_v40  ;;  %v1626_v40 = vld [vmem:[#allocation3 + $0x78] sm:$0xff]  }
 0x998   :  { %v720_v45 = vpop.xlane.xlu0 %719 }
 0x999   :  { %v728_v46 = vpop.xlane.xlu1 %727 }
 0x99a   :  { %v732_v47 = vmax.f32 %v728_v46, 1e-24  ;;  %v736_v48 = vsub.f32 %v720_v45, %v728_v46  ;;  %v1627_v46 = vld [vmem:[%s2045_s10] sm:$0xff]  }
 0x99c   :  { %v738_v49 = vmax.f32 %v736_v48, 1e-24  ;;  %v723_v50 = vpop.xlane.xlu0 %722  ;;  %1653 = vrsqrt.f32 %v732_v47  ;;  %v1628_v47 = vld [vmem:[%s2045_s10 + $0x8] sm:$0xff]  }
 0x99d   :  { %v731_v51 = vpop.xlane.xlu1 %730 }
 0x99e   :  { %1655 = vrsqrt.f32 %v738_v49  ;;  %v733_v52 = vmax.f32 %v731_v51, 1e-24  ;;  %v737_v53 = vsub.f32 %v723_v50, %v731_v51 }
 0x9a0   :  { %v739_v54 = vmax.f32 %v737_v53, 1e-24  ;;  %1657 = vrsqrt.f32 %v733_v52 }
 0x9a2   :  { %1659 = vrsqrt.f32 %v739_v54 }
 0x9a6   :  { %v1654_v55 = vpop.eup %1653 }
 0x9a8   :  { %v1656_v56 = vpop.eup %1655 }
 0x9a9   :  { %v742_v57 = vsel %vm70_vm5, %v1654_v55, %v1656_v56 }
 0x9aa   :  { %v744_v58 = vmul.f32 %v742_v57, %v714_v28  ;;  %v1658_v59 = vpop.eup %1657  ;;  %v1622_v28 = vld [vmem:[#allocation3 + $0x58] sm:$0xff]  }
 0x9ac   :  { %v1660_v60 = vpop.eup %1659  ;;  %v746_v61 = vpack.c.bf16 %v744_v58, %v744_v58 }
 0x9ad   :  { %v743_v62 = vsel %vm70_vm5, %v1658_v59, %v1660_v60 }
 0x9ae   :  { %v1957_v63 = vunpack.c.l.b16 %v746_v61  ;;  %v745_v0 = vmul.f32 %v743_v62, %v715_v31  ;;  %v1623_v31 = vld [vmem:[#allocation3 + $0x60] sm:$0xff]  }
 0x9b0   :  { %v747_v2 = vpack.c.bf16 %v745_v0, %v745_v0  ;;  %v761_v5 = vrot.slane %v1957_v63, 1  ;;  %v883_v14 = vrot.slane %v1957_v63, 2  ;;  %v948_v17 = vrot.slane %v1957_v63, 3 }
 0x9b1   :  { %v1013_v26 = vrot.slane %v1957_v63, 4  ;;  %v1078_v30 = vrot.slane %v1957_v63, 5  ;;  %v1143_v38 = vrot.slane %v1957_v63, 6  ;;  %v1208_v42 = vrot.slane %v1957_v63, 7 }
 0x9b2   :  { %v1959_v3 = vunpack.c.l.b16 %v747_v2 }
 0x9b4   :  { %v763_v6 = vsel %vm762_vm6, %v1959_v3, %v761_v5  ;;  %v820_v9 = vrot.slane %v1959_v3, 7  ;;  %v884_v12 = vrot.slane %v1959_v3, 1  ;;  %v949_v15 = vrot.slane %v1959_v3, 2 }
 0x9b5   :  { %v764_v10 = vpack.c.b16 %v763_v6, %v763_v6  ;;  %v1014_v22 = vrot.slane %v1959_v3, 3  ;;  %v1079_v27 = vrot.slane %v1959_v3, 4  ;;  %v1144_v35 = vrot.slane %v1959_v3, 5 }
 0x9b6   :  { %v821_v24 = vsel %vm762_vm6, %v820_v9, %v1957_v63  ;;  %v885_v16 = vsel %vm762_vm6, %v884_v12, %v883_v14  ;;  %v950_v19 = vsel %vm762_vm6, %v949_v15, %v948_v17  ;;  %v1209_v39 = vrot.slane %v1959_v3, 6  ;;  %v1415_v17 = vld [vmem:[%s2044_s9] ss:$0 sm:$0xff] }
 0x9b7   :  { %1534 = vmatmul.mubr.msk.bf16.vlgmr.msra.gmra.mrb[16].mxu1 %vm235_vm4, %v764_v10  ;;  %v822_v13 = vpack.c.b16 %v821_v24, %v821_v24  ;;  %v886_v20 = vpack.c.b16 %v885_v16, %v885_v16  ;;  %v951_v23 = vpack.c.b16 %v950_v19, %v950_v19  ;;  %v1015_v29 = vsel %vm762_vm6, %v1014_v22, %v1013_v26 }
 0x9b8   :  { %1546 = vmatpush3.bf16.msra.mxu1 %v1615_v8  ;;  %1549 = vmatprep.mubr.msk.bf16.mxu1 %vm1693_vm0, %v1692_v1  ;;  %v1080_v32 = vsel %vm762_vm6, %v1079_v27, %v1078_v30  ;;  %v1016_v33 = vpack.c.b16 %v1015_v29, %v1015_v29  ;;  %v1145_v41 = vsel %vm762_vm6, %v1144_v35, %v1143_v38  ;;  %v1419_v30 = vld [vmem:[%s2046_s11] ss:$0 sm:$0xff] }
 0x9b9   :  { %1542 = vmatmul.mubr.msk.bf16.vlgmr.msra.gmra.mrb[20].mxu0 %vm235_vm4, %v822_v13  ;;  %1547 = vmatprep.subr.bf16.mxu1 %v1692_v1  ;;  %v1081_v36 = vpack.c.b16 %v1080_v32, %v1080_v32  ;;  %v1210_v43 = vsel %vm762_vm6, %v1209_v39, %v1208_v42  ;;  %v1146_v44 = vpack.c.b16 %v1145_v41, %v1145_v41  ;;  %v1420_v35 = vld [vmem:[#allocation2] ss:$0 sm:$0xff] }
 0x9ba   :  { %1554 = vmatpush3.bf16.msra.mxu0 %v1616_v11  ;;  %1557 = vmatprep.mubr.msk.bf16.mxu0 %vm1693_vm0, %v1692_v1  ;;  %v1211_v45 = vpack.c.b16 %v1210_v43, %v1210_v43 }
 0x9bb   :  { %1555 = vmatprep.subr.bf16.mxu0 %v1692_v1 }
 0x9bc   :  { %1548 = vmatpush3.bf16.msra.mxu1 %v1617_v4 }
 0x9bd   :  { %1561 = vmatprep.subr.bf16.mxu1 %v1692_v1 }
 0x9be   :  { %1556 = vmatpush3.bf16.msra.mxu0 %v1618_v7 }
 0x9bf   :  { %1550 = vmatmul.mubr.msk.bf16.vlgmr.msra.gmra.mrb[20].mxu1 %vm235_vm4, %v886_v20  ;;  %1569 = vmatprep.subr.bf16.mxu0 %v1692_v1 }
 0x9c0   :  { %1562 = vmatpush3.bf16.msra.mxu1 %v1619_v18  ;;  %1565 = vmatprep.mubr.msk.bf16.mxu1 %vm1693_vm0, %v1692_v1 }
 0x9c1   :  { %1558 = vmatmul.mubr.msk.bf16.vlgmr.msra.gmra.mrb[24].mxu0 %vm235_vm4, %v951_v23  ;;  %1563 = vmatprep.subr.bf16.mxu1 %v1692_v1 }
 0x9c2   :  { %1570 = vmatpush3.bf16.msra.mxu0 %v1620_v21  ;;  %1573 = vmatprep.mubr.msk.bf16.mxu0 %vm1693_vm0, %v1692_v1 }
 0x9c3   :  { %1571 = vmatprep.subr.bf16.mxu0 %v1692_v1 }
 0x9c4   :  { %1564 = vmatpush3.bf16.msra.mxu1 %v1621_v25 }
 0x9c5   :  { %1577 = vmatprep.subr.bf16.mxu1 %v1692_v1 }
 0x9c6   :  { %1572 = vmatpush3.bf16.msra.mxu0 %v1622_v28 }
 0x9c7   :  { %1566 = vmatmul.mubr.msk.bf16.vlgmr.msra.gmra.mrb[24].mxu1 %vm235_vm4, %v1016_v33  ;;  %1585 = vmatprep.subr.bf16.mxu0 %v1692_v1 }
 0x9c8   :  { %1578 = vmatpush3.bf16.msra.mxu1 %v1623_v31  ;;  %1581 = vmatprep.mubr.msk.bf16.mxu1 %vm1693_vm0, %v1692_v1 }
 0x9c9   :  { %1574 = vmatmul.mubr.msk.bf16.vlgmr.msra.gmra.mrb[28].mxu0 %vm235_vm4, %v1081_v36  ;;  %1579 = vmatprep.subr.bf16.mxu1 %v1692_v1 }
 0x9ca   :  { %1586 = vmatpush3.bf16.msra.mxu0 %v1624_v34  ;;  %1589 = vmatprep.mubr.msk.bf16.mxu0 %vm1693_vm0, %v1692_v1 }
 0x9cb   :  { %1587 = vmatprep.subr.bf16.mxu0 %v1692_v1 }
 0x9cc   :  { %1580 = vmatpush3.bf16.msra.mxu1 %v1625_v37 }
 0x9cd   :  { %1593 = vmatprep.subr.bf16.mxu1 %v1692_v1 }
 0x9ce   :  { %1588 = vmatpush3.bf16.msra.mxu0 %v1626_v40 }
 0x9cf   :  { %1582 = vmatmul.mubr.msk.bf16.vlgmr.msra.gmra.mrb[28].mxu1 %vm235_vm4, %v1146_v44 }
 0x9d0   :  { %1597 = vmatprep.mubr.msk.bf16.mxu1 %vm1693_vm0, %v1692_v1  ;;  %1594 = vmatpush3.bf16.msra.mxu1 %v1627_v46 }
 0x9d1   :  { %1590 = vmatmul.mubr.msk.bf16.vlgmr.msra.gmra.mrb[32].mxu0 %vm235_vm4, %v1211_v45  ;;  %1595 = vmatprep.subr.bf16.mxu1 %v1692_v1 }
 0x9d4   :  { %1596 = vmatpush3.bf16.msra.mxu1 %v1628_v47 }
 0xa8a   :  { %v814_v48 = vpop.f32.mrb[16].mxu1 }
 0xa8b   :  { %v1535_v49 = vpop.f32.mrb[17].mxu1 }
 0xa8c   :  { %v817_v50 = vpop.f32.mrb[18].mxu1  ;;  %v872_v51 = vpop.f32.mrb[20].mxu0 }
 0xa8d   :  { %v873_v52 = vadd.f32 %v872_v51, %v814_v48  ;;  %v1536_v53 = vpop.f32.mrb[19].mxu1  ;;  %v1543_v54 = vpop.f32.mrb[21].mxu0 }
 0xa8e   :  { %v875_v55 = vpop.f32.mrb[22].mxu0 }
 0xa8f   :  { %v1544_v56 = vpop.f32.mrb[23].mxu0 }
 0xa92   :  { %v936_v57 = vpop.f32.mrb[20].mxu1 }
 0xa93   :  { %v942_v58 = vadd.f32 %v936_v57, %v873_v52  ;;  %v1551_v59 = vpop.f32.mrb[21].mxu1 }
 0xa94   :  { %v939_v60 = vpop.f32.mrb[22].mxu1  ;;  %v1001_v61 = vpop.f32.mrb[24].mxu0 }
 0xa95   :  { %v1007_v1 = vadd.f32 %v1001_v61, %v942_v58  ;;  %v1552_v62 = vpop.f32.mrb[23].mxu1  ;;  %v1559_v63 = vpop.f32.mrb[25].mxu0 }
 0xa96   :  { %v1004_v0 = vpop.f32.mrb[26].mxu0 }
 0xa97   :  { %v1560_v2 = vpop.f32.mrb[27].mxu0 }
 0xa9a   :  { %v1066_v3 = vpop.f32.mrb[24].mxu1 }
 0xa9b   :  { %v1072_v5 = vadd.f32 %v1066_v3, %v1007_v1  ;;  %v1567_v6 = vpop.f32.mrb[25].mxu1 }
 0xa9c   :  { %v1069_v8 = vpop.f32.mrb[26].mxu1  ;;  %v1131_v9 = vpop.f32.mrb[28].mxu0 }
 0xa9d   :  { %v1137_v10 = vadd.f32 %v1131_v9, %v1072_v5  ;;  %v1568_v24 = vpop.f32.mrb[27].mxu1  ;;  %v1575_v11 = vpop.f32.mrb[29].mxu0 }
 0xa9e   :  { %v1134_v12 = vpop.f32.mrb[30].mxu0 }
 0xa9f   :  { %v1576_v13 = vpop.f32.mrb[31].mxu0 }
 0xaa2   :  { %v1196_v4 = vpop.f32.mrb[28].mxu1 }
 0xaa3   :  { %v1202_v14 = vadd.f32 %v1196_v4, %v1137_v10  ;;  %v1583_v15 = vpop.f32.mrb[29].mxu1 }
 0xaa4   :  { %v1199_v7 = vpop.f32.mrb[30].mxu1  ;;  %v1261_v16 = vpop.f32.mrb[32].mxu0 }
 0xaa5   :  { %v1267_v18 = vadd.f32 %v1261_v16, %v1202_v14  ;;  %v1584_v19 = vpop.f32.mrb[31].mxu1  ;;  %v1591_v20 = vpop.f32.mrb[33].mxu0 }
 0xaa6   :  { %v1264_v21 = vpop.f32.mrb[34].mxu0 }
 0xaa7   :  { %v1275_v22 = vadd.f32 %v1415_v17, %v1267_v18  ;;  %v1592_v23 = vpop.f32.mrb[35].mxu0 }
 0xaa9   :  { %v1276_v25 = vpack.c.bf16 %v1275_v22, %v1275_v22 }
 0xaab   :  { %1598 = vmatmul.mubr.msk.bf16.vlgmr.msra.gmra.mrb[32].mxu1 %vm235_vm4, %v1276_v25 }
 0xb7e   :  { %v1330_v26 = vpop.f32.mrb[32].mxu1 }
 0xb7f   :  { %v1336_v27 = vmul.f32 %v1330_v26, %v1275_v22  ;;  %v1599_v28 = vpop.f32.mrb[33].mxu1 }
 0xb80   :  { %v1333_v29 = vpop.f32.mrb[34].mxu1 }
 0xb81   :  { %v1337_v31 = vmax.f32 %v1336_v27, 0.0  ;;  %v1600_v32 = vpop.f32.mrb[35].mxu1 }
 0xb83   :  { %v1345_v33 = vmul.f32 %v1419_v30, %v1337_v31 }
 0xb85   :  { %v1347_v34 = vsel %vm1346_vm7, %v1345_v33, 0.0 }
 0xb86   :  { %1348 = vadd.xlane.f32.xlu0 %v1347_v34 }
 0xc13   :  { %v1349_v36 = vpop.xlane.xlu0 %1348 }
 0xc14   :  { %v1357_v37 = vadd.f32 %v1420_v35, %v1349_v36 }
 0xc16   :  { %v1358_v38 = vsub.f32 0.0, %v1357_v37 }
 0xc18   :  { %v1359_v39 = vmul.f32 1.442695, %v1358_v38 }
 0xc1a   :  { %1661 = vpow2.f32 %v1359_v39 }
 0xc24   :  { %v1662_v40 = vpop.eup %1661 }
 0xc25   :  { %v1361_v41 = vadd.f32 1.0, %v1662_v40 }
 0xc27   :  { %1663 = vrcp.f32 %v1361_v41 }
 0xc31   :  { %v1664_v42 = vpop.eup %1663 }
 0xc32   :  { %1365 = vst.msk [vmem:[%s2048_s13] sm:$0x3] %vm1364_vm8, %v1664_v42 }
 0xc33   :  { %1370 = vsyncpa [#allocation4], 1 }

</bundles_post_ra>
